<compile_context>
chip_gen: v7x
topology: tpu7x:2x2x1
jax: 0.10.0
libtpu: 0.0.40
codegen_flags: <defaults>
</compile_context>

<pallas_src>
import functools

import jax
import jax.numpy as jnp
from jax.experimental import pallas as pl
from jax.experimental.pallas import tpu as pltpu


# ----------------------------------------------------------------------------
# Fused BasicBlock kernel (one batch element per grid step)
# ----------------------------------------------------------------------------
def make_fused_basic_block_kernel(H, W, Cin, Cout, stride):
    assert stride == 2, "fused kernel is specialized for the configured stride=2"
    assert H % 2 == 0 and W % 2 == 0
    Ho, Wo = H // stride, W // stride
    P = Ho * Wo              # flattened output spatial size
    K1 = 9 * Cin             # conv1 im2col contraction length
    K2 = 9 * Cout            # conv2 im2col contraction length

    def kernel(x_ref,      # (1, 4, Ho, Wo, Cin)  parity planes: x[2r+a', 2c+b', :]
               w1_ref,     # (K1, Cout)   conv1 weight, BN1 folded, (kh,kw,ci) row-major
               b1_ref,     # (1, Cout)
               w2t_ref,    # (Cout, K2)   conv2 weight^T, BN2 folded
               b2t_ref,    # (Cout, 1)
               wdt_ref,    # (Cout, Cin)  1x1 downsample weight^T, BNd folded
               bdt_ref,    # (Cout, 1)
               o_ref,      # (1, Cout, P) channels-first flattened output
               xs2d_ref,   # VMEM (4, Ho+1, Wo+1, Cin): zero-padded space-to-depth x
               p1_ref,     # VMEM (P, K1): conv1 im2col
               o1p_ref,    # VMEM (Ho+2, Wo+2, Cout): zero-padded conv1 output
               p2_ref):    # VMEM (P, K2): conv2 im2col
        f32 = jnp.float32

        # -- 1. Zero-padded space-to-depth view of x, assembled in VMEM ----------
        #    xs2d[a*2+b, r, c, :] = x_padded[2r+a, 2c+b, :]   (1-pixel zero halo).
        #    x_ref planes are indexed by the parity (a', b') of the UNPADDED image,
        #    so padded-parity plane (a,b) comes from unpadded plane (1-a, 1-b) with
        #    a one-slot shift (the halo strips that are never written stay zero).
        xs2d_ref[...] = jnp.zeros_like(xs2d_ref)
        xs2d_ref[3, 0:Ho, 0:Wo, :] = x_ref[0, 0]            # pad (1,1) <- even/even
        xs2d_ref[2, 0:Ho, 1:Wo + 1, :] = x_ref[0, 1]        # pad (1,0) <- even/odd
        xs2d_ref[1, 1:Ho + 1, 0:Wo, :] = x_ref[0, 2]        # pad (0,1) <- odd/even
        xs2d_ref[0, 1:Ho + 1, 1:Wo + 1, :] = x_ref[0, 3]    # pad (0,0) <- odd/odd

        # -- 2. conv1 (3x3, stride 2) as a single im2col matmul ------------------
        #    p1[p, (kh*3+kw)*Cin + ci] = x_padded[2*ph + kh, 2*pw + kw, ci]
        #    Only static slices (parity plane + window shift), then one MXU dot.
        center = None
        for kh in range(3):
            for kw in range(3):
                t = kh * 3 + kw
                plane = (kh % 2) * 2 + (kw % 2)
                r0, c0 = kh // 2, kw // 2
                slab = xs2d_ref[plane, r0:r0 + Ho, c0:c0 + Wo, :]   # (Ho, Wo, Cin)
                slab2d = slab.reshape(P, Cin)
                p1_ref[:, t * Cin:(t + 1) * Cin] = slab2d
                if t == 4:           # centre tap == x sampled at the output grid
                    center = slab2d

        out1 = jnp.dot(p1_ref[...], w1_ref[...], preferred_element_type=f32)
        out1 = jnp.maximum(out1 + b1_ref[...], 0.0)                  # (P, Cout)

        # -- 3. Identity / downsample branch (1x1 conv stride 2 + BN) ------------
        #    Computed channels-first so it adds directly into the final result:
        #    ident[c, p] = sum_ci wdt[c, ci] * center[p, ci]   (A @ B^T form)
        ident = jax.lax.dot_general(wdt_ref[...], center,
                                    (((1,), (1,)), ((), ())),
                                    preferred_element_type=f32)       # (Cout, P)
        ident = ident + bdt_ref[...]

        # -- 4. conv2 (3x3, stride 1) over the zero-padded conv1 output ----------
        o1p_ref[...] = jnp.zeros_like(o1p_ref)
        o1p_ref[1:Ho + 1, 1:Wo + 1, :] = out1.reshape(Ho, Wo, Cout)
        for kh in range(3):
            for kw in range(3):
                t = kh * 3 + kw
                slab = o1p_ref[kh:kh + Ho, kw:kw + Wo, :]            # (Ho, Wo, Cout)
                p2_ref[:, t * Cout:(t + 1) * Cout] = slab.reshape(P, Cout)

        # Transposed matmul (A @ B^T) so the result is channels-first and the
        # store is lane-dense along the flattened spatial axis.
        out2 = jax.lax.dot_general(w2t_ref[...], p2_ref[...],
                                   (((1,), (1,)), ((), ())),
                                   preferred_element_type=f32)        # (Cout, P)
        out2 = jnp.maximum(out2 + b2t_ref[...] + ident, 0.0)

        # NCHW-compatible store: o[n, c, ph*Wo + pw]
        o_ref[0] = out2.astype(o_ref.dtype)

    return kernel


# ----------------------------------------------------------------------------
# Wrapper: parameter folding + single pallas_call
# ----------------------------------------------------------------------------
@functools.partial(jax.jit, static_argnames=("stride",))
def basic_block_forward(x_nchw, params, *, stride=2):
    """BasicBlock forward.  x_nchw: (N, Cin, H, W) -> (N, Cout, H/stride, W/stride)."""
    N, Cin, H, W = x_nchw.shape
    Cout = params["w1"].shape[-1]
    Ho, Wo = H // stride, W // stride
    P = Ho * Wo
    K1, K2 = 9 * Cin, 9 * Cout

    # Input: NCHW -> four stride-2 parity planes (N, 4, Ho, Wo, Cin).
    # This single tiny transform replaces the NCHW->NHWC transpose of the previous
    # version; no host-side pad / strided slice / output transpose remain.
    x_par = (x_nchw.astype(jnp.float32)
             .reshape(N, Cin, Ho, 2, Wo, 2)
             .transpose(0, 3, 5, 2, 4, 1)            # (N, a', b', r, c, ci)
             .reshape(N, 4, Ho, Wo, Cin))

    # Parameters: fold BN scale into the conv weights (one-time parameter transform).
    # Matmuls kept in f32 to match the f32 reference; for large-scale use these
    # could be cast to bf16 (keep the f32 epilogue) for v6e/v7x MXU throughput.
    w1f = (params["w1"] * params["s1"]).reshape(K1, Cout).astype(jnp.float32)
    b1 = params["b1"].reshape(1, Cout).astype(jnp.float32)
    w2t = (params["w2"] * params["s2"]).reshape(K2, Cout).T.astype(jnp.float32)
    b2t = params["b2"].reshape(Cout, 1).astype(jnp.float32)
    if Cin != Cout or stride != 1:
        # option 'B' projection shortcut: 1x1 conv (stride) + BN
        wdt = (params["wd"] * params["sd"]).T.astype(jnp.float32)    # (Cout, Cin)
        bdt = params["bd"].reshape(Cout, 1).astype(jnp.float32)
    else:
        # pure identity shortcut, expressed through the same (correctly strided) path
        wdt = jnp.eye(Cout, dtype=jnp.float32)
        bdt = jnp.zeros((Cout, 1), jnp.float32)

    out = pl.pallas_call(
        make_fused_basic_block_kernel(H, W, Cin, Cout, stride),
        grid=(N,),
        in_specs=[
            pl.BlockSpec((1, 4, Ho, Wo, Cin), lambda n: (n, 0, 0, 0, 0)),
            pl.BlockSpec((K1, Cout), lambda n: (0, 0)),
            pl.BlockSpec((1, Cout), lambda n: (0, 0)),
            pl.BlockSpec((Cout, K2), lambda n: (0, 0)),
            pl.BlockSpec((Cout, 1), lambda n: (0, 0)),
            pl.BlockSpec((Cout, Cin), lambda n: (0, 0)),
            pl.BlockSpec((Cout, 1), lambda n: (0, 0)),
        ],
        out_specs=pl.BlockSpec((1, Cout, P), lambda n: (n, 0, 0)),
        out_shape=jax.ShapeDtypeStruct((N, Cout, P), jnp.float32),
        scratch_shapes=[
            pltpu.VMEM((4, Ho + 1, Wo + 1, Cin), jnp.float32),   # padded s2d input
            pltpu.VMEM((P, K1), jnp.float32),                    # conv1 im2col
            pltpu.VMEM((Ho + 2, Wo + 2, Cout), jnp.float32),     # padded conv1 output
            pltpu.VMEM((P, K2), jnp.float32),                    # conv2 im2col
        ],
        compiler_params=pltpu.CompilerParams(
            dimension_semantics=("parallel",)),                  # 2 steps -> both v7x TCs
    )(x_par, w1f, b1, w2t, b2t, wdt, bdt)

    # (N, Cout, Ho*Wo) -> NCHW: pure reshape, no transpose needed.
    return out.reshape(N, Cout, Ho, Wo)


# ----------------------------------------------------------------------------
# Pure-JAX reference (for self-check)
# ----------------------------------------------------------------------------
def ref_basic_block(x_nchw, params, *, stride):
    x = jnp.transpose(x_nchw, (0, 2, 3, 1))

    def conv(inp, w, s, pad):
        return jax.lax.conv_general_dilated(
            inp, w, (s, s), [(pad, pad), (pad, pad)],
            dimension_numbers=("NHWC", "HWIO", "NHWC"))

    y = conv(x, params["w1"], stride, 1) * params["s1"] + params["b1"]
    y = jnp.maximum(y, 0.0)
    wd_hwio = params["wd"].reshape(1, 1, *params["wd"].shape)
    iden = conv(x, wd_hwio, stride, 0) * params["sd"] + params["bd"]
    y2 = conv(y, params["w2"], 1, 1) * params["s2"] + params["b2"]
    out = jnp.maximum(y2 + iden, 0.0)
    return jnp.transpose(out, (0, 3, 1, 2))


# ----------------------------------------------------------------------------
# Deterministic parameter init + run
# ----------------------------------------------------------------------------
def fold_bn(gamma, beta, mean, var, eps=1e-5):
    scale = gamma / jnp.sqrt(var + eps)
    bias = beta - mean * scale
    return scale, bias


if __name__ == "__main__":
    N, IN_C, OUT_C, H, W = 2, 4, 8, 16, 16
    STRIDE = 2

    key = jax.random.PRNGKey(0)
    ks = jax.random.split(key, 8)

    # conv weights (HWIO), no conv bias because batch_norm=True
    w1 = jax.random.normal(ks[0], (3, 3, IN_C, OUT_C), jnp.float32) * 0.1
    w2 = jax.random.normal(ks[1], (3, 3, OUT_C, OUT_C), jnp.float32) * 0.1
    wd = jax.random.normal(ks[2], (IN_C, OUT_C), jnp.float32) * 0.1   # 1x1 conv

    def bn_params(k):
        k1, k2, k3, k4 = jax.random.split(k, 4)
        gamma = 1.0 + 0.1 * jax.random.normal(k1, (OUT_C,), jnp.float32)
        beta = 0.1 * jax.random.normal(k2, (OUT_C,), jnp.float32)
        mean = 0.1 * jax.random.normal(k3, (OUT_C,), jnp.float32)
        var = 1.0 + 0.1 * jax.random.uniform(k4, (OUT_C,), jnp.float32)
        return fold_bn(gamma, beta, mean, var)

    s1, b1 = bn_params(ks[3])
    s2, b2 = bn_params(ks[4])
    sd, bd = bn_params(ks[5])

    params = dict(w1=w1, s1=s1, b1=b1,
                  w2=w2, s2=s2, b2=b2,
                  wd=wd, sd=sd, bd=bd)

    x = jax.random.normal(ks[6], (N, IN_C, H, W), jnp.float32)  # NCHW, like PyTorch

    out = jax.block_until_ready(basic_block_forward(x, params, stride=STRIDE))
    assert out.shape == (N, OUT_C, H // STRIDE, W // STRIDE), out.shape

    ref = jax.block_until_ready(ref_basic_block(x, params, stride=STRIDE))
    err = float(jnp.max(jnp.abs(out - ref)))
    assert jnp.allclose(out, ref, atol=1e-4, rtol=1e-4), f"max abs err {err}"

    print("KERNEL_OK")
</pallas_src>

<mosaic_0001>
module attributes {stable_mosaic.version = 11 : i64} {
  func.func @kernel(%arg0: i32, %arg1: memref<1x4x8x8x4xf32, #tpu.memory_space<vmem>>, %arg2: memref<36x8xf32, #tpu.memory_space<vmem>>, %arg3: memref<1x8xf32, #tpu.memory_space<vmem>>, %arg4: memref<8x72xf32, #tpu.memory_space<vmem>>, %arg5: memref<8x1xf32, #tpu.memory_space<vmem>>, %arg6: memref<8x4xf32, #tpu.memory_space<vmem>>, %arg7: memref<8x1xf32, #tpu.memory_space<vmem>>, %arg8: memref<1x8x64xf32, #tpu.memory_space<vmem>>, %arg9: memref<4x9x9x4xf32, #tpu.memory_space<vmem>>, %arg10: memref<64x36xf32, #tpu.memory_space<vmem>>, %arg11: memref<10x10x8xf32, #tpu.memory_space<vmem>>, %arg12: memref<64x72xf32, #tpu.memory_space<vmem>>) attributes {dimension_semantics = [#tpu.dimension_semantics<parallel>], iteration_bounds = array<i64: 2>, scalar_prefetch = 0 : i64, scratch_operands = 4 : i64, tpu.core_type = #tpu.core_type<tc>, window_params = [{transform_indices = @transform_0, window_bounds = array<i64: 1, 4, 8, 8, 4>}, {pipeline_mode = #tpu.pipeline_mode<synchronous>, transform_indices = @transform_1, window_bounds = array<i64: 36, 8>}, {pipeline_mode = #tpu.pipeline_mode<synchronous>, transform_indices = @transform_2, window_bounds = array<i64: 1, 8>}, {pipeline_mode = #tpu.pipeline_mode<synchronous>, transform_indices = @transform_3, window_bounds = array<i64: 8, 72>}, {pipeline_mode = #tpu.pipeline_mode<synchronous>, transform_indices = @transform_4, window_bounds = array<i64: 8, 1>}, {pipeline_mode = #tpu.pipeline_mode<synchronous>, transform_indices = @transform_5, window_bounds = array<i64: 8, 4>}, {pipeline_mode = #tpu.pipeline_mode<synchronous>, transform_indices = @transform_6, window_bounds = array<i64: 8, 1>}, {transform_indices = @transform_7, window_bounds = array<i64: 1, 8, 64>}]} {
    %cst = arith.constant 0.000000e+00 : f32
    %0 = vector.broadcast %cst : f32 to vector<4x9x9x4xf32>
    %c0 = arith.constant 0 : index
    %c0_0 = arith.constant 0 : index
    %c0_1 = arith.constant 0 : index
    %c0_2 = arith.constant 0 : index
    %1 = vector.load %arg9[%c0, %c0_0, %c0_1, %c0_2] : memref<4x9x9x4xf32, #tpu.memory_space<vmem>>, vector<4x9x9x4xf32>
    tpu.vector_store %arg9[%c0, %c0_0, %c0_1, %c0_2], %0 {strides = array<i32>} : memref<4x9x9x4xf32, #tpu.memory_space<vmem>>, vector<4x9x9x4xf32>,
    %c0_3 = arith.constant 0 : index
    %c0_4 = arith.constant 0 : index
    %c0_5 = arith.constant 0 : index
    %c0_6 = arith.constant 0 : index
    %c0_7 = arith.constant 0 : index
    %2 = vector.load %arg1[%c0_3, %c0_4, %c0_5, %c0_6, %c0_7] : memref<1x4x8x8x4xf32, #tpu.memory_space<vmem>>, vector<1x1x8x8x4xf32>
    %3 = vector.shape_cast %2 : vector<1x1x8x8x4xf32> to vector<8x8x4xf32>
    %c3 = arith.constant 3 : index
    %c0_8 = arith.constant 0 : index
    %c0_9 = arith.constant 0 : index
    %c0_10 = arith.constant 0 : index
    %4 = vector.load %arg9[%c3, %c0_8, %c0_9, %c0_10] : memref<4x9x9x4xf32, #tpu.memory_space<vmem>>, vector<1x8x8x4xf32>
    %5 = vector.shape_cast %4 : vector<1x8x8x4xf32> to vector<8x8x4xf32>
    %6 = vector.shape_cast %3 : vector<8x8x4xf32> to vector<1x8x8x4xf32>
    tpu.vector_store %arg9[%c3, %c0_8, %c0_9, %c0_10], %6 {strides = array<i32>} : memref<4x9x9x4xf32, #tpu.memory_space<vmem>>, vector<1x8x8x4xf32>,
    %c0_11 = arith.constant 0 : index
    %c1 = arith.constant 1 : index
    %c0_12 = arith.constant 0 : index
    %c0_13 = arith.constant 0 : index
    %c0_14 = arith.constant 0 : index
    %7 = vector.load %arg1[%c0_11, %c1, %c0_12, %c0_13, %c0_14] : memref<1x4x8x8x4xf32, #tpu.memory_space<vmem>>, vector<1x1x8x8x4xf32>
    %8 = vector.shape_cast %7 : vector<1x1x8x8x4xf32> to vector<8x8x4xf32>
    %c2 = arith.constant 2 : index
    %c0_15 = arith.constant 0 : index
    %c1_16 = arith.constant 1 : index
    %c0_17 = arith.constant 0 : index
    %9 = vector.load %arg9[%c2, %c0_15, %c1_16, %c0_17] : memref<4x9x9x4xf32, #tpu.memory_space<vmem>>, vector<1x8x8x4xf32>
    %10 = vector.shape_cast %9 : vector<1x8x8x4xf32> to vector<8x8x4xf32>
    %11 = vector.shape_cast %8 : vector<8x8x4xf32> to vector<1x8x8x4xf32>
    tpu.vector_store %arg9[%c2, %c0_15, %c1_16, %c0_17], %11 {strides = array<i32>} : memref<4x9x9x4xf32, #tpu.memory_space<vmem>>, vector<1x8x8x4xf32>,
    %c0_18 = arith.constant 0 : index
    %c2_19 = arith.constant 2 : index
    %c0_20 = arith.constant 0 : index
    %c0_21 = arith.constant 0 : index
    %c0_22 = arith.constant 0 : index
    %12 = vector.load %arg1[%c0_18, %c2_19, %c0_20, %c0_21, %c0_22] : memref<1x4x8x8x4xf32, #tpu.memory_space<vmem>>, vector<1x1x8x8x4xf32>
    %13 = vector.shape_cast %12 : vector<1x1x8x8x4xf32> to vector<8x8x4xf32>
    %c1_23 = arith.constant 1 : index
    %c1_24 = arith.constant 1 : index
    %c0_25 = arith.constant 0 : index
    %c0_26 = arith.constant 0 : index
    %14 = vector.load %arg9[%c1_23, %c1_24, %c0_25, %c0_26] : memref<4x9x9x4xf32, #tpu.memory_space<vmem>>, vector<1x8x8x4xf32>
    %15 = vector.shape_cast %14 : vector<1x8x8x4xf32> to vector<8x8x4xf32>
    %16 = vector.shape_cast %13 : vector<8x8x4xf32> to vector<1x8x8x4xf32>
    tpu.vector_store %arg9[%c1_23, %c1_24, %c0_25, %c0_26], %16 {strides = array<i32>} : memref<4x9x9x4xf32, #tpu.memory_space<vmem>>, vector<1x8x8x4xf32>,
    %c0_27 = arith.constant 0 : index
    %c3_28 = arith.constant 3 : index
    %c0_29 = arith.constant 0 : index
    %c0_30 = arith.constant 0 : index
    %c0_31 = arith.constant 0 : index
    %17 = vector.load %arg1[%c0_27, %c3_28, %c0_29, %c0_30, %c0_31] : memref<1x4x8x8x4xf32, #tpu.memory_space<vmem>>, vector<1x1x8x8x4xf32>
    %18 = vector.shape_cast %17 : vector<1x1x8x8x4xf32> to vector<8x8x4xf32>
    %c0_32 = arith.constant 0 : index
    %c1_33 = arith.constant 1 : index
    %c1_34 = arith.constant 1 : index
    %c0_35 = arith.constant 0 : index
    %19 = vector.load %arg9[%c0_32, %c1_33, %c1_34, %c0_35] : memref<4x9x9x4xf32, #tpu.memory_space<vmem>>, vector<1x8x8x4xf32>
    %20 = vector.shape_cast %19 : vector<1x8x8x4xf32> to vector<8x8x4xf32>
    %21 = vector.shape_cast %18 : vector<8x8x4xf32> to vector<1x8x8x4xf32>
    tpu.vector_store %arg9[%c0_32, %c1_33, %c1_34, %c0_35], %21 {strides = array<i32>} : memref<4x9x9x4xf32, #tpu.memory_space<vmem>>, vector<1x8x8x4xf32>,
    %c0_36 = arith.constant 0 : index
    %c0_37 = arith.constant 0 : index
    %c0_38 = arith.constant 0 : index
    %c0_39 = arith.constant 0 : index
    %22 = vector.load %arg9[%c0_36, %c0_37, %c0_38, %c0_39] : memref<4x9x9x4xf32, #tpu.memory_space<vmem>>, vector<1x8x8x4xf32>
    %23 = vector.shape_cast %22 : vector<1x8x8x4xf32> to vector<8x8x4xf32>
    %24 = vector.shape_cast %23 : vector<8x8x4xf32> to vector<64x4xf32>
    %c0_40 = arith.constant 0 : index
    %c0_41 = arith.constant 0 : index
    %25 = vector.load %arg10[%c0_40, %c0_41] : memref<64x36xf32, #tpu.memory_space<vmem>>, vector<64x4xf32>
    tpu.vector_store %arg10[%c0_40, %c0_41], %24 {strides = array<i32>} : memref<64x36xf32, #tpu.memory_space<vmem>>, vector<64x4xf32>,
    %c1_42 = arith.constant 1 : index
    %c0_43 = arith.constant 0 : index
    %c0_44 = arith.constant 0 : index
    %c0_45 = arith.constant 0 : index
    %26 = vector.load %arg9[%c1_42, %c0_43, %c0_44, %c0_45] : memref<4x9x9x4xf32, #tpu.memory_space<vmem>>, vector<1x8x8x4xf32>
    %27 = vector.shape_cast %26 : vector<1x8x8x4xf32> to vector<8x8x4xf32>
    %28 = vector.shape_cast %27 : vector<8x8x4xf32> to vector<64x4xf32>
    %c0_46 = arith.constant 0 : index
    %c4 = arith.constant 4 : index
    %29 = vector.load %arg10[%c0_46, %c4] : memref<64x36xf32, #tpu.memory_space<vmem>>, vector<64x4xf32>
    tpu.vector_store %arg10[%c0_46, %c4], %28 {strides = array<i32>} : memref<64x36xf32, #tpu.memory_space<vmem>>, vector<64x4xf32>,
    %c0_47 = arith.constant 0 : index
    %c0_48 = arith.constant 0 : index
    %c1_49 = arith.constant 1 : index
    %c0_50 = arith.constant 0 : index
    %30 = vector.load %arg9[%c0_47, %c0_48, %c1_49, %c0_50] : memref<4x9x9x4xf32, #tpu.memory_space<vmem>>, vector<1x8x8x4xf32>
    %31 = vector.shape_cast %30 : vector<1x8x8x4xf32> to vector<8x8x4xf32>
    %32 = vector.shape_cast %31 : vector<8x8x4xf32> to vector<64x4xf32>
    %c0_51 = arith.constant 0 : index
    %c8 = arith.constant 8 : index
    %33 = vector.load %arg10[%c0_51, %c8] : memref<64x36xf32, #tpu.memory_space<vmem>>, vector<64x4xf32>
    tpu.vector_store %arg10[%c0_51, %c8], %32 {strides = array<i32>} : memref<64x36xf32, #tpu.memory_space<vmem>>, vector<64x4xf32>,
    %c2_52 = arith.constant 2 : index
    %c0_53 = arith.constant 0 : index
    %c0_54 = arith.constant 0 : index
    %c0_55 = arith.constant 0 : index
    %34 = vector.load %arg9[%c2_52, %c0_53, %c0_54, %c0_55] : memref<4x9x9x4xf32, #tpu.memory_space<vmem>>, vector<1x8x8x4xf32>
    %35 = vector.shape_cast %34 : vector<1x8x8x4xf32> to vector<8x8x4xf32>
    %36 = vector.shape_cast %35 : vector<8x8x4xf32> to vector<64x4xf32>
    %c0_56 = arith.constant 0 : index
    %c12 = arith.constant 12 : index
    %37 = vector.load %arg10[%c0_56, %c12] : memref<64x36xf32, #tpu.memory_space<vmem>>, vector<64x4xf32>
    tpu.vector_store %arg10[%c0_56, %c12], %36 {strides = array<i32>} : memref<64x36xf32, #tpu.memory_space<vmem>>, vector<64x4xf32>,
    %c3_57 = arith.constant 3 : index
    %c0_58 = arith.constant 0 : index
    %c0_59 = arith.constant 0 : index
    %c0_60 = arith.constant 0 : index
    %38 = vector.load %arg9[%c3_57, %c0_58, %c0_59, %c0_60] : memref<4x9x9x4xf32, #tpu.memory_space<vmem>>, vector<1x8x8x4xf32>
    %39 = vector.shape_cast %38 : vector<1x8x8x4xf32> to vector<8x8x4xf32>
    %40 = vector.shape_cast %39 : vector<8x8x4xf32> to vector<64x4xf32>
    %c0_61 = arith.constant 0 : index
    %c16 = arith.constant 16 : index
    %41 = vector.load %arg10[%c0_61, %c16] : memref<64x36xf32, #tpu.memory_space<vmem>>, vector<64x4xf32>
    tpu.vector_store %arg10[%c0_61, %c16], %40 {strides = array<i32>} : memref<64x36xf32, #tpu.memory_space<vmem>>, vector<64x4xf32>,
    %c2_62 = arith.constant 2 : index
    %c0_63 = arith.constant 0 : index
    %c1_64 = arith.constant 1 : index
    %c0_65 = arith.constant 0 : index
    %42 = vector.load %arg9[%c2_62, %c0_63, %c1_64, %c0_65] : memref<4x9x9x4xf32, #tpu.memory_space<vmem>>, vector<1x8x8x4xf32>
    %43 = vector.shape_cast %42 : vector<1x8x8x4xf32> to vector<8x8x4xf32>
    %44 = vector.shape_cast %43 : vector<8x8x4xf32> to vector<64x4xf32>
    %c0_66 = arith.constant 0 : index
    %c20 = arith.constant 20 : index
    %45 = vector.load %arg10[%c0_66, %c20] : memref<64x36xf32, #tpu.memory_space<vmem>>, vector<64x4xf32>
    tpu.vector_store %arg10[%c0_66, %c20], %44 {strides = array<i32>} : memref<64x36xf32, #tpu.memory_space<vmem>>, vector<64x4xf32>,
    %c0_67 = arith.constant 0 : index
    %c1_68 = arith.constant 1 : index
    %c0_69 = arith.constant 0 : index
    %c0_70 = arith.constant 0 : index
    %46 = vector.load %arg9[%c0_67, %c1_68, %c0_69, %c0_70] : memref<4x9x9x4xf32, #tpu.memory_space<vmem>>, vector<1x8x8x4xf32>
    %47 = vector.shape_cast %46 : vector<1x8x8x4xf32> to vector<8x8x4xf32>
    %48 = vector.shape_cast %47 : vector<8x8x4xf32> to vector<64x4xf32>
    %c0_71 = arith.constant 0 : index
    %c24 = arith.constant 24 : index
    %49 = vector.load %arg10[%c0_71, %c24] : memref<64x36xf32, #tpu.memory_space<vmem>>, vector<64x4xf32>
    tpu.vector_store %arg10[%c0_71, %c24], %48 {strides = array<i32>} : memref<64x36xf32, #tpu.memory_space<vmem>>, vector<64x4xf32>,
    %c1_72 = arith.constant 1 : index
    %c1_73 = arith.constant 1 : index
    %c0_74 = arith.constant 0 : index
    %c0_75 = arith.constant 0 : index
    %50 = vector.load %arg9[%c1_72, %c1_73, %c0_74, %c0_75] : memref<4x9x9x4xf32, #tpu.memory_space<vmem>>, vector<1x8x8x4xf32>
    %51 = vector.shape_cast %50 : vector<1x8x8x4xf32> to vector<8x8x4xf32>
    %52 = vector.shape_cast %51 : vector<8x8x4xf32> to vector<64x4xf32>
    %c0_76 = arith.constant 0 : index
    %c28 = arith.constant 28 : index
    %53 = vector.load %arg10[%c0_76, %c28] : memref<64x36xf32, #tpu.memory_space<vmem>>, vector<64x4xf32>
    tpu.vector_store %arg10[%c0_76, %c28], %52 {strides = array<i32>} : memref<64x36xf32, #tpu.memory_space<vmem>>, vector<64x4xf32>,
    %c0_77 = arith.constant 0 : index
    %c1_78 = arith.constant 1 : index
    %c1_79 = arith.constant 1 : index
    %c0_80 = arith.constant 0 : index
    %54 = vector.load %arg9[%c0_77, %c1_78, %c1_79, %c0_80] : memref<4x9x9x4xf32, #tpu.memory_space<vmem>>, vector<1x8x8x4xf32>
    %55 = vector.shape_cast %54 : vector<1x8x8x4xf32> to vector<8x8x4xf32>
    %56 = vector.shape_cast %55 : vector<8x8x4xf32> to vector<64x4xf32>
    %c0_81 = arith.constant 0 : index
    %c32 = arith.constant 32 : index
    %57 = vector.load %arg10[%c0_81, %c32] : memref<64x36xf32, #tpu.memory_space<vmem>>, vector<64x4xf32>
    tpu.vector_store %arg10[%c0_81, %c32], %56 {strides = array<i32>} : memref<64x36xf32, #tpu.memory_space<vmem>>, vector<64x4xf32>,
    %c0_82 = arith.constant 0 : index
    %c0_83 = arith.constant 0 : index
    %58 = vector.load %arg10[%c0_82, %c0_83] : memref<64x36xf32, #tpu.memory_space<vmem>>, vector<64x36xf32>
    %c0_84 = arith.constant 0 : index
    %c0_85 = arith.constant 0 : index
    %59 = vector.load %arg2[%c0_84, %c0_85] : memref<36x8xf32, #tpu.memory_space<vmem>>, vector<36x8xf32>
    %cst_86 = arith.constant dense<0.000000e+00> : vector<64x8xf32>
    %60 = tpu.matmul %58, %59, %cst_86 {dimension_numbers = #tpu.dot_dimension_numbers<[1], [0], [0], [1], [0, 0, 1, 1], [], []>} : vector<64x36xf32>, vector<36x8xf32>, vector<64x8xf32> -> vector<64x8xf32>
    %c0_87 = arith.constant 0 : index
    %c0_88 = arith.constant 0 : index
    %61 = vector.load %arg3[%c0_87, %c0_88] : memref<1x8xf32, #tpu.memory_space<vmem>>, vector<1x8xf32>
    %62 = vector.broadcast %61 : vector<1x8xf32> to vector<64x8xf32>
    %63 = arith.addf %60, %62 : vector<64x8xf32>
    %cst_89 = arith.constant 0.000000e+00 : f32
    %64 = vector.broadcast %cst_89 : f32 to vector<64x8xf32>
    %65 = arith.maximumf %63, %64 : vector<64x8xf32>
    %c0_90 = arith.constant 0 : index
    %c0_91 = arith.constant 0 : index
    %66 = vector.load %arg6[%c0_90, %c0_91] : memref<8x4xf32, #tpu.memory_space<vmem>>, vector<8x4xf32>
    %cst_92 = arith.constant dense<0.000000e+00> : vector<8x64xf32>
    %67 = tpu.matmul %66, %40, %cst_92 {dimension_numbers = #tpu.dot_dimension_numbers<[1], [1], [0], [0], [0, 0, 1, 0], [], []>} : vector<8x4xf32>, vector<64x4xf32>, vector<8x64xf32> -> vector<8x64xf32>
    %c0_93 = arith.constant 0 : index
    %c0_94 = arith.constant 0 : index
    %68 = vector.load %arg7[%c0_93, %c0_94] : memref<8x1xf32, #tpu.memory_space<vmem>>, vector<8x1xf32>
    %69 = vector.broadcast %68 : vector<8x1xf32> to vector<8x64xf32>
    %70 = arith.addf %67, %69 : vector<8x64xf32>
    %cst_95 = arith.constant 0.000000e+00 : f32
    %71 = vector.broadcast %cst_95 : f32 to vector<10x10x8xf32>
    %c0_96 = arith.constant 0 : index
    %c0_97 = arith.constant 0 : index
    %c0_98 = arith.constant 0 : index
    %72 = vector.load %arg11[%c0_96, %c0_97, %c0_98] : memref<10x10x8xf32, #tpu.memory_space<vmem>>, vector<10x10x8xf32>
    tpu.vector_store %arg11[%c0_96, %c0_97, %c0_98], %71 {strides = array<i32>} : memref<10x10x8xf32, #tpu.memory_space<vmem>>, vector<10x10x8xf32>,
    %73 = vector.shape_cast %65 : vector<64x8xf32> to vector<8x8x8xf32>
    %c1_99 = arith.constant 1 : index
    %c1_100 = arith.constant 1 : index
    %c0_101 = arith.constant 0 : index
    %74 = vector.load %arg11[%c1_99, %c1_100, %c0_101] : memref<10x10x8xf32, #tpu.memory_space<vmem>>, vector<8x8x8xf32>
    tpu.vector_store %arg11[%c1_99, %c1_100, %c0_101], %73 {strides = array<i32>} : memref<10x10x8xf32, #tpu.memory_space<vmem>>, vector<8x8x8xf32>,
    %c0_102 = arith.constant 0 : index
    %c0_103 = arith.constant 0 : index
    %c0_104 = arith.constant 0 : index
    %75 = vector.load %arg11[%c0_102, %c0_103, %c0_104] : memref<10x10x8xf32, #tpu.memory_space<vmem>>, vector<8x8x8xf32>
    %76 = vector.shape_cast %75 : vector<8x8x8xf32> to vector<64x8xf32>
    %c0_105 = arith.constant 0 : index
    %c0_106 = arith.constant 0 : index
    %77 = vector.load %arg12[%c0_105, %c0_106] : memref<64x72xf32, #tpu.memory_space<vmem>>, vector<64x8xf32>
    tpu.vector_store %arg12[%c0_105, %c0_106], %76 {strides = array<i32>} : memref<64x72xf32, #tpu.memory_space<vmem>>, vector<64x8xf32>,
    %c0_107 = arith.constant 0 : index
    %c1_108 = arith.constant 1 : index
    %c0_109 = arith.constant 0 : index
    %78 = vector.load %arg11[%c0_107, %c1_108, %c0_109] : memref<10x10x8xf32, #tpu.memory_space<vmem>>, vector<8x8x8xf32>
    %79 = vector.shape_cast %78 : vector<8x8x8xf32> to vector<64x8xf32>
    %c0_110 = arith.constant 0 : index
    %c8_111 = arith.constant 8 : index
    %80 = vector.load %arg12[%c0_110, %c8_111] : memref<64x72xf32, #tpu.memory_space<vmem>>, vector<64x8xf32>
    tpu.vector_store %arg12[%c0_110, %c8_111], %79 {strides = array<i32>} : memref<64x72xf32, #tpu.memory_space<vmem>>, vector<64x8xf32>,
    %c0_112 = arith.constant 0 : index
    %c2_113 = arith.constant 2 : index
    %c0_114 = arith.constant 0 : index
    %81 = vector.load %arg11[%c0_112, %c2_113, %c0_114] : memref<10x10x8xf32, #tpu.memory_space<vmem>>, vector<8x8x8xf32>
    %82 = vector.shape_cast %81 : vector<8x8x8xf32> to vector<64x8xf32>
    %c0_115 = arith.constant 0 : index
    %c16_116 = arith.constant 16 : index
    %83 = vector.load %arg12[%c0_115, %c16_116] : memref<64x72xf32, #tpu.memory_space<vmem>>, vector<64x8xf32>
    tpu.vector_store %arg12[%c0_115, %c16_116], %82 {strides = array<i32>} : memref<64x72xf32, #tpu.memory_space<vmem>>, vector<64x8xf32>,
    %c1_117 = arith.constant 1 : index
    %c0_118 = arith.constant 0 : index
    %c0_119 = arith.constant 0 : index
    %84 = vector.load %arg11[%c1_117, %c0_118, %c0_119] : memref<10x10x8xf32, #tpu.memory_space<vmem>>, vector<8x8x8xf32>
    %85 = vector.shape_cast %84 : vector<8x8x8xf32> to vector<64x8xf32>
    %c0_120 = arith.constant 0 : index
    %c24_121 = arith.constant 24 : index
    %86 = vector.load %arg12[%c0_120, %c24_121] : memref<64x72xf32, #tpu.memory_space<vmem>>, vector<64x8xf32>
    tpu.vector_store %arg12[%c0_120, %c24_121], %85 {strides = array<i32>} : memref<64x72xf32, #tpu.memory_space<vmem>>, vector<64x8xf32>,
    %c1_122 = arith.constant 1 : index
    %c1_123 = arith.constant 1 : index
    %c0_124 = arith.constant 0 : index
    %87 = vector.load %arg11[%c1_122, %c1_123, %c0_124] : memref<10x10x8xf32, #tpu.memory_space<vmem>>, vector<8x8x8xf32>
    %88 = vector.shape_cast %87 : vector<8x8x8xf32> to vector<64x8xf32>
    %c0_125 = arith.constant 0 : index
    %c32_126 = arith.constant 32 : index
    %89 = vector.load %arg12[%c0_125, %c32_126] : memref<64x72xf32, #tpu.memory_space<vmem>>, vector<64x8xf32>
    tpu.vector_store %arg12[%c0_125, %c32_126], %88 {strides = array<i32>} : memref<64x72xf32, #tpu.memory_space<vmem>>, vector<64x8xf32>,
    %c1_127 = arith.constant 1 : index
    %c2_128 = arith.constant 2 : index
    %c0_129 = arith.constant 0 : index
    %90 = vector.load %arg11[%c1_127, %c2_128, %c0_129] : memref<10x10x8xf32, #tpu.memory_space<vmem>>, vector<8x8x8xf32>
    %91 = vector.shape_cast %90 : vector<8x8x8xf32> to vector<64x8xf32>
    %c0_130 = arith.constant 0 : index
    %c40 = arith.constant 40 : index
    %92 = vector.load %arg12[%c0_130, %c40] : memref<64x72xf32, #tpu.memory_space<vmem>>, vector<64x8xf32>
    tpu.vector_store %arg12[%c0_130, %c40], %91 {strides = array<i32>} : memref<64x72xf32, #tpu.memory_space<vmem>>, vector<64x8xf32>,
    %c2_131 = arith.constant 2 : index
    %c0_132 = arith.constant 0 : index
    %c0_133 = arith.constant 0 : index
    %93 = vector.load %arg11[%c2_131, %c0_132, %c0_133] : memref<10x10x8xf32, #tpu.memory_space<vmem>>, vector<8x8x8xf32>
    %94 = vector.shape_cast %93 : vector<8x8x8xf32> to vector<64x8xf32>
    %c0_134 = arith.constant 0 : index
    %c48 = arith.constant 48 : index
    %95 = vector.load %arg12[%c0_134, %c48] : memref<64x72xf32, #tpu.memory_space<vmem>>, vector<64x8xf32>
    tpu.vector_store %arg12[%c0_134, %c48], %94 {strides = array<i32>} : memref<64x72xf32, #tpu.memory_space<vmem>>, vector<64x8xf32>,
    %c2_135 = arith.constant 2 : index
    %c1_136 = arith.constant 1 : index
    %c0_137 = arith.constant 0 : index
    %96 = vector.load %arg11[%c2_135, %c1_136, %c0_137] : memref<10x10x8xf32, #tpu.memory_space<vmem>>, vector<8x8x8xf32>
    %97 = vector.shape_cast %96 : vector<8x8x8xf32> to vector<64x8xf32>
    %c0_138 = arith.constant 0 : index
    %c56 = arith.constant 56 : index
    %98 = vector.load %arg12[%c0_138, %c56] : memref<64x72xf32, #tpu.memory_space<vmem>>, vector<64x8xf32>
    tpu.vector_store %arg12[%c0_138, %c56], %97 {strides = array<i32>} : memref<64x72xf32, #tpu.memory_space<vmem>>, vector<64x8xf32>,
    %c2_139 = arith.constant 2 : index
    %c2_140 = arith.constant 2 : index
    %c0_141 = arith.constant 0 : index
    %99 = vector.load %arg11[%c2_139, %c2_140, %c0_141] : memref<10x10x8xf32, #tpu.memory_space<vmem>>, vector<8x8x8xf32>
    %100 = vector.shape_cast %99 : vector<8x8x8xf32> to vector<64x8xf32>
    %c0_142 = arith.constant 0 : index
    %c64 = arith.constant 64 : index
    %101 = vector.load %arg12[%c0_142, %c64] : memref<64x72xf32, #tpu.memory_space<vmem>>, vector<64x8xf32>
    tpu.vector_store %arg12[%c0_142, %c64], %100 {strides = array<i32>} : memref<64x72xf32, #tpu.memory_space<vmem>>, vector<64x8xf32>,
    %c0_143 = arith.constant 0 : index
    %c0_144 = arith.constant 0 : index
    %102 = vector.load %arg4[%c0_143, %c0_144] : memref<8x72xf32, #tpu.memory_space<vmem>>, vector<8x72xf32>
    %c0_145 = arith.constant 0 : index
    %c0_146 = arith.constant 0 : index
    %103 = vector.load %arg12[%c0_145, %c0_146] : memref<64x72xf32, #tpu.memory_space<vmem>>, vector<64x72xf32>
    %cst_147 = arith.constant dense<0.000000e+00> : vector<8x64xf32>
    %104 = tpu.matmul %102, %103, %cst_147 {dimension_numbers = #tpu.dot_dimension_numbers<[1], [1], [0], [0], [0, 0, 1, 0], [], []>} : vector<8x72xf32>, vector<64x72xf32>, vector<8x64xf32> -> vector<8x64xf32>
    %c0_148 = arith.constant 0 : index
    %c0_149 = arith.constant 0 : index
    %105 = vector.load %arg5[%c0_148, %c0_149] : memref<8x1xf32, #tpu.memory_space<vmem>>, vector<8x1xf32>
    %106 = vector.broadcast %105 : vector<8x1xf32> to vector<8x64xf32>
    %107 = arith.addf %104, %106 : vector<8x64xf32>
    %108 = arith.addf %107, %70 : vector<8x64xf32>
    %cst_150 = arith.constant 0.000000e+00 : f32
    %109 = vector.broadcast %cst_150 : f32 to vector<8x64xf32>
    %110 = arith.maximumf %108, %109 : vector<8x64xf32>
    %c0_151 = arith.constant 0 : index
    %c0_152 = arith.constant 0 : index
    %c0_153 = arith.constant 0 : index
    %111 = vector.load %arg8[%c0_151, %c0_152, %c0_153] : memref<1x8x64xf32, #tpu.memory_space<vmem>>, vector<1x8x64xf32>
    %112 = vector.shape_cast %111 : vector<1x8x64xf32> to vector<8x64xf32>
    %113 = vector.shape_cast %110 : vector<8x64xf32> to vector<1x8x64xf32>
    tpu.vector_store %arg8[%c0_151, %c0_152, %c0_153], %113 {strides = array<i32>} : memref<1x8x64xf32, #tpu.memory_space<vmem>>, vector<1x8x64xf32>,
    return
  }
  func.func @transform_0(%arg0: i32) -> (i32, i32, i32, i32, i32) {
    %c0_i32 = arith.constant 0 : i32
    %c0_i32_0 = arith.constant 0 : i32
    %c0_i32_1 = arith.constant 0 : i32
    %c0_i32_2 = arith.constant 0 : i32
    %c0_i32_3 = arith.constant 0 : i32
    return %arg0, %c0_i32, %c0_i32_0, %c0_i32_1, %c0_i32_2 : i32, i32, i32, i32, i32
  }
  func.func @transform_1(%arg0: i32) -> (i32, i32) {
    %c0_i32 = arith.constant 0 : i32
    %c0_i32_0 = arith.constant 0 : i32
    %c0_i32_1 = arith.constant 0 : i32
    return %c0_i32, %c0_i32_0 : i32, i32
  }
  func.func @transform_2(%arg0: i32) -> (i32, i32) {
    %c0_i32 = arith.constant 0 : i32
    %c0_i32_0 = arith.constant 0 : i32
    %c0_i32_1 = arith.constant 0 : i32
    return %c0_i32, %c0_i32_0 : i32, i32
  }
  func.func @transform_3(%arg0: i32) -> (i32, i32) {
    %c0_i32 = arith.constant 0 : i32
    %c0_i32_0 = arith.constant 0 : i32
    %c0_i32_1 = arith.constant 0 : i32
    return %c0_i32, %c0_i32_0 : i32, i32
  }
  func.func @transform_4(%arg0: i32) -> (i32, i32) {
    %c0_i32 = arith.constant 0 : i32
    %c0_i32_0 = arith.constant 0 : i32
    %c0_i32_1 = arith.constant 0 : i32
    return %c0_i32, %c0_i32_0 : i32, i32
  }
  func.func @transform_5(%arg0: i32) -> (i32, i32) {
    %c0_i32 = arith.constant 0 : i32
    %c0_i32_0 = arith.constant 0 : i32
    %c0_i32_1 = arith.constant 0 : i32
    return %c0_i32, %c0_i32_0 : i32, i32
  }
  func.func @transform_6(%arg0: i32) -> (i32, i32) {
    %c0_i32 = arith.constant 0 : i32
    %c0_i32_0 = arith.constant 0 : i32
    %c0_i32_1 = arith.constant 0 : i32
    return %c0_i32, %c0_i32_0 : i32, i32
  }
  func.func @transform_7(%arg0: i32) -> (i32, i32, i32) {
    %c0_i32 = arith.constant 0 : i32
    %c0_i32_0 = arith.constant 0 : i32
    %c0_i32_1 = arith.constant 0 : i32
    return %arg0, %c0_i32, %c0_i32_0 : i32, i32, i32
  }
}

</mosaic_0001>

<bundles_post_ra>
// kernel: basic_block_forward.1
= control target key start
LH: loop header
LB: loop body
LE: loop exit
PB: predicated region body
PF: predicated region fallthrough
CT: control target
= control target key end

     0   :  { %s1986_s24 = smov 0   ;;  %s2659_s0 = inlined_call_operand.vmem [shape: f32[2,4,8,8,4], index: 0, kind: input, shape index: {}]   ;;  %s2660_s1 = inlined_call_operand.vmem [shape: f32[36,8], index: 1, kind: input, shape index: {}]   ;;  %s2661_s2 = inlined_call_operand.vmem [shape: f32[1,8], index: 2, kind: input, shape index: {}]   ;;  %s2662_s3 = inlined_call_operand.vmem [shape: f32[8,72], index: 3, kind: input, shape index: {}]   ;;  %s2663_s4 = inlined_call_operand.vmem [shape: f32[8,1], index: 4, kind: input, shape index: {}]   ;;  %s2664_s5 = inlined_call_operand.vmem [shape: f32[8,4], index: 5, kind: input, shape index: {}]   ;;  %s2665_s6 = inlined_call_operand.vmem [shape: f32[8,1], index: 6, kind: input, shape index: {}]   ;;  %s2666_s7 = inlined_call_operand.vmem [shape: f32[2,8,64], index: 7, kind: output, shape index: {}]  }
   0x1 LB: > { %s1699_s25 = sadd.s32 4294967295, %s1928_s24   ;;  %p1703_p0 = scmp.ge.s32.totalorder %s1928_s24, 1  ;;  %s1928_s24 = sphi %s1986_s24, %s17_s24  }
   0x2   : > { %p237_p1 = scmp.lt.s32.totalorder %s1928_s24, 3 }
   0x4   : > { %p238_p2 = pnand %p1703_p0, %p237_p1 }
   0x5   : > { %vm277_vm0 = vcmask (!%p238_p2), 31744   ;;  %vm279_vm1 = vcmask (!%p238_p2), 24576   ;;  %v1930_v0 = vmov (!%p238_p2), 0.0   ;;  %p268_p3 = scmp.lt.s32.totalorder (!%p238_p2), %s1699_s25, 1  ;;  %s1931_s30 = smov (!%p238_p2), 4   ;;  %v839_v61 = vld [vmem:[%s2660_s1] sm:$0xff] (!%p238_p2) }
   0x6   : > { %241 = sbr.rel (%p238_p2) target bundleno = 898 (0x382), region = 48  ;;  %297 = vst.msk [vmem:[#allocation2 + $0x90] sm:$0xff] (!%p238_p2), %vm277_vm0, %v1930_v0  ;;  %278 = vst.msk [vmem:[#allocation2] sm:$0xff] (!%p238_p2), %vm277_vm0, %v1930_v0  ;;  %s1932_s8 = smov (!%p238_p2), 8   ;;  %v840_v62 = vld [vmem:[%s2660_s1 + $0x8] sm:$0xff] (!%p238_p2)  ;;  %vm876_vm2 = vcmask (!%p238_p2), 1043456  }
   0x7   : > { %281 = vst.msk [vmem:[#allocation2 + $0x10] sm:$0xff] (!%p238_p2), %vm277_vm0, %v1930_v0  ;;  %283 = vst.msk [vmem:[#allocation2 + $0x20] sm:$0xff] (!%p238_p2), %vm277_vm0, %v1930_v0  ;;  %s1933_s9 = smov (!%p238_p2), 12   ;;  %s1934_s10 = smov (!%p238_p2), 16   ;;  %v1853_v63 = vpack.c.bf16 (!%p238_p2), %v840_v62, %v839_v61  ;;  %vm479_vm3 = vcmask (!%p238_p2), 64544   ;;  %vm528_vm4 = vcmask (!%p238_p2), 97344  }
   0x8   : > { %285 = vst.msk [vmem:[#allocation2 + $0x30] sm:$0xff] (!%p238_p2), %vm277_vm0, %v1930_v0  ;;  %287 = vst.msk [vmem:[#allocation2 + $0x40] sm:$0xff] (!%p238_p2), %vm277_vm0, %v1930_v0  ;;  %s1935_s11 = smov (!%p238_p2), 20   ;;  %s1936_s12 = smov (!%p238_p2), 24   ;;  %vm577_vm5 = vcmask (!%p238_p2), 130144   ;;  %vm626_vm6 = vcmask (!%p238_p2), 162944  }
   0x9   : > { %289 = vst.msk [vmem:[#allocation2 + $0x50] sm:$0xff] (!%p238_p2), %vm277_vm0, %v1930_v0  ;;  %291 = vst.msk [vmem:[#allocation2 + $0x60] sm:$0xff] (!%p238_p2), %vm277_vm0, %v1930_v0  ;;  %s1937_s17 = smov (!%p238_p2), 28   ;;  %1854 = vmatprep.subr.bf16.mxu0 (!%p238_p2), %v1853_v63  ;;  %vm675_vm7 = vcmask (!%p238_p2), 195744   ;;  %vm724_vm8 = vcmask (!%p238_p2), 228544   ;;  %vm773_vm9 = vcmask (!%p238_p2), 261344  }
   0xa   : > { %293 = vst.msk [vmem:[#allocation2 + $0x70] sm:$0xff] (!%p238_p2), %vm277_vm0, %v1930_v0  ;;  %295 = vst.msk [vmem:[#allocation2 + $0x80] sm:$0xff] (!%p238_p2), %vm277_vm0, %v1930_v0  ;;  %1856 = vmatpush3.bf16.msra.mxu0 (!%p238_p2), %v1853_v63  ;;  %vm822_vm10 = vcmask (!%p238_p2), 294144   ;;  %vm851_vm11 = vcmask (!%p238_p2), 293888   ;;  %vm1089_vm12 = vcmask (!%p238_p2), 64512   ;;  %vm1091_vm13 = vcmask (!%p238_p2), 58368  }
   0xb   : > { %299 = vst.msk [vmem:[#allocation2 + $0xa0] sm:$0xff] (!%p238_p2), %vm277_vm0, %v1930_v0  ;;  %301 = vst.msk [vmem:[#allocation2 + $0xb0] sm:$0xff] (!%p238_p2), %vm277_vm0, %v1930_v0  ;;  %s1939_s27 = smov (!%p238_p2), 48   ;;  %vm1176_vm14 = vcmask (!%p238_p2), 130112   ;;  %vm1225_vm15 = vcmask (!%p238_p2), 195712  }
   0xc   : > { %303 = vst.msk [vmem:[#allocation2 + $0xc0] sm:$0xff] (!%p238_p2), %vm277_vm0, %v1930_v0  ;;  %305 = vst.msk [vmem:[#allocation2 + $0xd0] sm:$0xff] (!%p238_p2), %vm277_vm0, %v1930_v0 }
   0xd   : > { %307 = vst.msk [vmem:[#allocation2 + $0xe0] sm:$0xff] %vm277_vm0, %v1930_v0  ;;  %309 = vst.msk [vmem:[#allocation2 + $0xf0] sm:$0xff] %vm277_vm0, %v1930_v0  ;;  %s2672_s25 = smov (!%p268_p3, %s1699_s25), 1  ;;  %v439_v4 = vld [vmem:[#allocation2 + $0x90] sm:$0xff]  ;;  %v422_v9 = vld [vmem:[#allocation2] sm:$0xff] }
   0xe   : > { %311 = vst.msk [vmem:[#allocation2 + $0x100] sm:$0xff] %vm277_vm0, %v1930_v0  ;;  %313 = vst.msk [vmem:[#allocation2 + $0x110] sm:$0xff] %vm277_vm0, %v1930_v0  ;;  %s1761_s26 = sshll.u32 %s2672_s25, 8  ;;  %455 = vrot.lane.b32.xlu0 %v439_v4, %s1931_s30  ;;  %v842_v4 = vld [vmem:[%s2660_s1 + $0x18] sm:$0xff]  ;;  %s1706_s18 = sshll.u32 %s2672_s25, 3 }
   0xf   : > { %315 = vst.msk [vmem:[#allocation2 + $0x120] sm:$0xff] %vm277_vm0, %v1930_v0  ;;  %317 = vst.msk [vmem:[#allocation2 + $0x130] sm:$0xff] %vm277_vm0, %v1930_v0  ;;  %s2106_s29 = scalar_lea.vmem %s2659_s0, %s1761_s26  ;;  %s1938_s26 = smov 32  }
  0x10   : > { %319 = vst.msk [vmem:[#allocation2 + $0x140] sm:$0xff] %vm277_vm0, %v1930_v0  ;;  %321 = vst.msk [vmem:[#allocation2 + $0x150] sm:$0xff] %vm277_vm0, %v1930_v0  ;;  %v1715_v1 = vld [vmem:[%s2106_s29 + $0x80] sm:$0xff]  ;;  %v1708_v6 = vld [vmem:[%s2106_s29 + $0x48] sm:$0xff]  ;;  %s276_s21 = scalar_lea.vmem %s2666_s7, %s1706_s18 }
  0x11   : > { %323 = vst.msk [vmem:[#allocation2 + $0x160] sm:$0xff] %vm277_vm0, %v1930_v0  ;;  %325 = vst.msk [vmem:[#allocation2 + $0x170] sm:$0xff] %vm277_vm0, %v1930_v0  ;;  %v1723_v2 = vld [vmem:[%s2106_s29 + $0xc0] sm:$0xff]  ;;  %v352_v8 = vld [vmem:[%s2106_s29 + $0x8] sm:$0xff] }
  0x12   : > { %327 = vst.msk [vmem:[#allocation2 + $0x180] sm:$0xff] %vm277_vm0, %v1930_v0  ;;  %329 = vst.msk [vmem:[#allocation2 + $0x190] sm:$0xff] %vm277_vm0, %v1930_v0  ;;  %v1707_v3 = vld [vmem:[%s2106_s29 + $0x40] sm:$0xff]  ;;  %v1716_v10 = vld [vmem:[%s2106_s29 + $0x88] sm:$0xff] }
  0x13   : > { %333 = vst.msk [vmem:[#allocation2 + $0x1b0] sm:$0xff] %vm277_vm0, %v1930_v0  ;;  %335 = vst.msk [vmem:[#allocation2 + $0x1c0] sm:$0xff] %vm277_vm0, %v1930_v0  ;;  %v351_v7 = vld [vmem:[%s2106_s29] sm:$0xff]  ;;  %v1717_v11 = vld [vmem:[%s2106_s29 + $0x90] sm:$0xff] }
  0x14   : > { %337 = vst.msk [vmem:[#allocation2 + $0x1d0] sm:$0xff] %vm277_vm0, %v1930_v0  ;;  %339 = vst.msk [vmem:[#allocation2 + $0x1e0] sm:$0xff] %vm277_vm0, %v1930_v0  ;;  %v1724_v12 = vld [vmem:[%s2106_s29 + $0xc8] sm:$0xff]  ;;  %v1725_v13 = vld [vmem:[%s2106_s29 + $0xd0] sm:$0xff] }
  0x15   : > { %341 = vst.msk [vmem:[#allocation2 + $0x1f0] sm:$0xff] %vm277_vm0, %v1930_v0  ;;  %343 = vst.msk [vmem:[#allocation2 + $0x200] sm:$0xff] %vm277_vm0, %v1930_v0  ;;  %v1709_v14 = vld [vmem:[%s2106_s29 + $0x50] sm:$0xff]  ;;  %v1710_v15 = vld [vmem:[%s2106_s29 + $0x58] sm:$0xff] }
  0x16   : > { %345 = vst.msk [vmem:[#allocation2 + $0x210] sm:$0xff] %vm277_vm0, %v1930_v0  ;;  %347 = vst.msk [vmem:[#allocation2 + $0x220] sm:$0xff] %vm277_vm0, %v1930_v0  ;;  %v353_v16 = vld [vmem:[%s2106_s29 + $0x10] sm:$0xff]  ;;  %v354_v17 = vld [vmem:[%s2106_s29 + $0x18] sm:$0xff] }
  0x17   : > { %280 = vst.msk [vmem:[#allocation2 + $0x8] sm:$0x1] %vm279_vm1, %v1930_v0  ;;  %282 = vst.msk [vmem:[#allocation2 + $0x18] sm:$0x1] %vm279_vm1, %v1930_v0  ;;  %v1726_v18 = vld [vmem:[%s2106_s29 + $0xd8] sm:$0xff]  ;;  %v1719_v20 = vld [vmem:[%s2106_s29 + $0xa0] sm:$0xff] }
  0x18   : > { %284 = vst.msk [vmem:[#allocation2 + $0x28] sm:$0x1] %vm279_vm1, %v1930_v0  ;;  %286 = vst.msk [vmem:[#allocation2 + $0x38] sm:$0x1] %vm279_vm1, %v1930_v0  ;;  %v1718_v19 = vld [vmem:[%s2106_s29 + $0x98] sm:$0xff]  ;;  %v1727_v21 = vld [vmem:[%s2106_s29 + $0xe0] sm:$0xff] }
  0x19   : > { %288 = vst.msk [vmem:[#allocation2 + $0x48] sm:$0x1] %vm279_vm1, %v1930_v0  ;;  %290 = vst.msk [vmem:[#allocation2 + $0x58] sm:$0x1] %vm279_vm1, %v1930_v0  ;;  %v1711_v22 = vld [vmem:[%s2106_s29 + $0x60] sm:$0xff]  ;;  %v1712_v23 = vld [vmem:[%s2106_s29 + $0x68] sm:$0xff] }
  0x1a   : > { %292 = vst.msk [vmem:[#allocation2 + $0x68] sm:$0x1] %vm279_vm1, %v1930_v0  ;;  %294 = vst.msk [vmem:[#allocation2 + $0x78] sm:$0x1] %vm279_vm1, %v1930_v0  ;;  %v355_v24 = vld [vmem:[%s2106_s29 + $0x20] sm:$0xff]  ;;  %v356_v39 = vld [vmem:[%s2106_s29 + $0x28] sm:$0xff] }
  0x1b   : > { %296 = vst.msk [vmem:[#allocation2 + $0x88] sm:$0x1] %vm279_vm1, %v1930_v0  ;;  %316 = vst.msk [vmem:[#allocation2 + $0x128] sm:$0x1] %vm279_vm1, %v1930_v0  ;;  %v1728_v43 = vld [vmem:[%s2106_s29 + $0xe8] sm:$0xff]  ;;  %v1721_v45 = vld [vmem:[%s2106_s29 + $0xb0] sm:$0xff] }
  0x1c   : > { %318 = vst.msk [vmem:[#allocation2 + $0x138] sm:$0x1] %vm279_vm1, %v1930_v0  ;;  %320 = vst.msk [vmem:[#allocation2 + $0x148] sm:$0x1] %vm279_vm1, %v1930_v0  ;;  %v1720_v44 = vld [vmem:[%s2106_s29 + $0xa8] sm:$0xff]  ;;  %v1729_v46 = vld [vmem:[%s2106_s29 + $0xf0] sm:$0xff] }
  0x1d   : > { %322 = vst.msk [vmem:[#allocation2 + $0x158] sm:$0x1] %vm279_vm1, %v1930_v0  ;;  %324 = vst.msk [vmem:[#allocation2 + $0x168] sm:$0x1] %vm279_vm1, %v1930_v0  ;;  %v1713_v47 = vld [vmem:[%s2106_s29 + $0x70] sm:$0xff]  ;;  %v1714_v48 = vld [vmem:[%s2106_s29 + $0x78] sm:$0xff] }
  0x1e   : > { %326 = vst.msk [vmem:[#allocation2 + $0x178] sm:$0x1] %vm279_vm1, %v1930_v0  ;;  %328 = vst.msk [vmem:[#allocation2 + $0x188] sm:$0x1] %vm279_vm1, %v1930_v0  ;;  %v488_v5 = vld [vmem:[#allocation2 + $0x1] sm:$0xff]  ;;  %v357_v49 = vld [vmem:[%s2106_s29 + $0x30] sm:$0xff] }
  0x1f   : > { %330 = vst.msk [vmem:[#allocation2 + $0x198] sm:$0x1] %vm279_vm1, %v1930_v0  ;;  %504 = vrot.lane.b32.xlu1 %v488_v5, %s1932_s8  ;;  %v358_v50 = vld [vmem:[%s2106_s29 + $0x38] sm:$0xff]  ;;  %vm2511_vm1 = vmpackc.low %vm277_vm0, %vm277_vm0 }
  0x20   : > { %396 = vst.msk [vmem:[#allocation2 + $0xa0] sm:$0xff] %vm277_vm0, %v1715_v1  ;;  %414 = vst.msk [vmem:[#allocation2 + $0x11] sm:$0xff] %vm277_vm0, %v1723_v2  ;;  %v1730_v52 = vld [vmem:[%s2106_s29 + $0xf8] sm:$0xff] }
  0x21   : > { %378 = vst.msk [vmem:[#allocation2 + $0x121] sm:$0xff] %vm277_vm0, %v1707_v3  ;;  %379 = vst.msk [vmem:[#allocation2 + $0x131] sm:$0xff] %vm277_vm0, %v1708_v6  ;;  %v1722_v53 = vld [vmem:[%s2106_s29 + $0xb8] sm:$0xff]  ;;  %v841_v3 = vld [vmem:[%s2660_s1 + $0x10] sm:$0xff] }
  0x22   : > { %360 = vst.msk [vmem:[#allocation2 + $0x1b0] sm:$0xff] %vm277_vm0, %v351_v7  ;;  %361 = vst.msk [vmem:[#allocation2 + $0x1c0] sm:$0xff] %vm277_vm0, %v352_v8  ;;  %v1857_v5 = vpack.c.bf16 %v842_v4, %v841_v3  ;;  %v843_v6 = vld [vmem:[%s2660_s1 + $0x20] sm:$0xf] }
  0x23   : > { %430 = vst.msk [vmem:[#allocation3] sm:$0xff] %vm277_vm0, %v422_v9  ;;  %397 = vst.msk [vmem:[#allocation2 + $0xb0] sm:$0xff] %vm277_vm0, %v1716_v10 }
  0x24   : > { %398 = vst.msk [vmem:[#allocation2 + $0xc0] sm:$0xff] %vm277_vm0, %v1717_v11  ;;  %415 = vst.msk [vmem:[#allocation2 + $0x21] sm:$0xff] %vm277_vm0, %v1724_v12  ;;  %1858 = vmatprep.subr.bf16.mxu0 %v1857_v5 }
  0x25   : > { %416 = vst.msk [vmem:[#allocation2 + $0x31] sm:$0xff] %vm277_vm0, %v1725_v13  ;;  %380 = vst.msk [vmem:[#allocation2 + $0x141] sm:$0xff] %vm277_vm0, %v1709_v14  ;;  %1860 = vmatpush3.bf16.msra.mxu0 %v1857_v5 }
  0x26   : > { %381 = vst.msk [vmem:[#allocation2 + $0x151] sm:$0xff] %vm277_vm0, %v1710_v15  ;;  %362 = vst.msk [vmem:[#allocation2 + $0x1d0] sm:$0xff] %vm277_vm0, %v353_v16  ;;  %1801 = vmatprep.subr.msk.mxu0 %vm876_vm2, %v843_v6 }
  0x27   : > { %363 = vst.msk [vmem:[#allocation2 + $0x1e0] sm:$0xff] %vm277_vm0, %v354_v17  ;;  %417 = vst.msk [vmem:[#allocation2 + $0x41] sm:$0xff] %vm277_vm0, %v1726_v18  ;;  %v2150_v25 = vld [vmem:[#allocation2 + $0xa0] sm:$0xff]  ;;  %v2152_v26 = vld [vmem:[#allocation2 + $0x11] sm:$0xff] }
  0x28   : > { %399 = vst.msk [vmem:[#allocation2 + $0xd0] sm:$0xff] %vm277_vm0, %v1718_v19  ;;  %400 = vst.msk [vmem:[#allocation2 + $0xe0] sm:$0xff] %vm277_vm0, %v1719_v20  ;;  %457 = vrot.lane.b32.xlu0 %v2150_v25, %s1931_s30  ;;  %506 = vrot.lane.b32.xlu1 %v2152_v26, %s1932_s8  ;;  %v537_v27 = vld [vmem:[#allocation2 + $0x120] sm:$0xff]  ;;  %v538_v28 = vld [vmem:[#allocation2 + $0x130] sm:$0xff] }
  0x29   : > { %418 = vst.msk [vmem:[#allocation2 + $0x51] sm:$0xff] %vm277_vm0, %v1727_v21  ;;  %382 = vst.msk [vmem:[#allocation2 + $0x161] sm:$0xff] %vm277_vm0, %v1711_v22  ;;  %v2161_v29 = vld [vmem:[#allocation2 + $0x1b0] sm:$0xff]  ;;  %v2163_v30 = vld [vmem:[#allocation2 + $0x1c0] sm:$0xff]  ;;  %1802 = vmatpush3.msk.msra.mxu0 %vm876_vm2, %v843_v6  ;;  %vm1944_vm2 = vmmov 0  }
  0x2a   : > { %383 = vst.msk [vmem:[#allocation2 + $0x171] sm:$0xff] %vm277_vm0, %v1712_v23  ;;  %364 = vst.msk [vmem:[#allocation2 + $0x1f0] sm:$0xff] %vm277_vm0, %v355_v24  ;;  %v684_v31 = vld [vmem:[#allocation2 + $0x10] sm:$0xff]  ;;  %v1862_v32 = vpack.c.bf16 %v2163_v30, %v2161_v29  ;;  %v635_v40 = vld [vmem:[#allocation2 + $0x121] sm:$0xff]  ;;  %1850 = vmatprep.mubr.msk.f32.mxu1 %vm1944_vm2, %v1930_v0 }
  0x2b   : > { %431 = vst.msk [vmem:[#allocation3 + $0x8] sm:$0xff] %vm277_vm0, %v684_v31  ;;  %v685_v33 = vld [vmem:[#allocation2 + $0x20] sm:$0xff]  ;;  %v441_v41 = vld [vmem:[#allocation2 + $0xb0] sm:$0xff]  ;;  %365 = vst.msk [vmem:[#allocation2 + $0x200] sm:$0xff] %vm277_vm0, %v356_v39 }
  0x2c   : > { %553 = vrot.lane.b32.xlu0 %v537_v27, %s1933_s9  ;;  %555 = vrot.lane.b32.xlu1 %v538_v28, %s1933_s9  ;;  %432 = vst.msk [vmem:[#allocation3 + $0x10] sm:$0xff] %vm277_vm0, %v685_v33  ;;  %v2177_v37 = vld [vmem:[#allocation2 + $0x30] sm:$0xff]  ;;  %419 = vst.msk [vmem:[#allocation2 + $0x61] sm:$0xff] %vm277_vm0, %v1728_v43  ;;  %v442_v56 = vld [vmem:[#allocation2 + $0xc0] sm:$0xff] }
  0x2d   : > { %v2170_v34 = vld [vmem:[#allocation2 + $0x1d0] sm:$0xff]  ;;  %433 = vst.msk [vmem:[#allocation3 + $0x18] sm:$0xff] %vm277_vm0, %v2177_v37  ;;  %401 = vst.msk [vmem:[#allocation2 + $0xf0] sm:$0xff] %vm277_vm0, %v1720_v44  ;;  %v490_v57 = vld [vmem:[#allocation2 + $0x21] sm:$0xff] }
  0x2e   : > { %v2172_v35 = vld [vmem:[#allocation2 + $0x1e0] sm:$0xff]  ;;  %402 = vst.msk [vmem:[#allocation2 + $0x100] sm:$0xff] %vm277_vm0, %v1721_v45  ;;  %420 = vst.msk [vmem:[#allocation2 + $0x71] sm:$0xff] %vm277_vm0, %v1729_v46  ;;  %v636_v51 = vld [vmem:[#allocation2 + $0x131] sm:$0xff] }
  0x2f   : > { %v1866_v36 = vpack.c.bf16 %v2172_v35, %v2170_v34  ;;  %v2179_v38 = vld [vmem:[#allocation2 + $0x40] sm:$0xff]  ;;  %384 = vst.msk [vmem:[#allocation2 + $0x181] sm:$0xff] %vm277_vm0, %v1713_v47  ;;  %385 = vst.msk [vmem:[#allocation2 + $0x191] sm:$0xff] %vm277_vm0, %v1714_v48  ;;  %v491_v1 = vld [vmem:[#allocation2 + $0x31] sm:$0xff] }
  0x30   : > { %434 = vst.msk [vmem:[#allocation3 + $0x20] sm:$0xff] %vm277_vm0, %v2179_v38  ;;  %602 = vrot.lane.b32.xlu0 %v2161_v29, %s1934_s10  ;;  %604 = vrot.lane.b32.xlu1 %v2163_v30, %s1934_s10  ;;  %v2191_v42 = vld [vmem:[#allocation2 + $0x50] sm:$0xff]  ;;  %366 = vst.msk [vmem:[#allocation2 + $0x210] sm:$0xff] %vm277_vm0, %v357_v49  ;;  %v539_v2 = vld [vmem:[#allocation2 + $0x140] sm:$0xff] }
  0x31   : > { %435 = vst.msk [vmem:[#allocation3 + $0x28] sm:$0xff] %vm277_vm0, %v2191_v42  ;;  %367 = vst.msk [vmem:[#allocation2 + $0x220] sm:$0xff] %vm277_vm0, %v358_v50  ;;  %v2219_v54 = vld [vmem:[#allocation2 + $0x1f0] sm:$0xff]  ;;  %v637_v8 = vld [vmem:[#allocation2 + $0x141] sm:$0xff] }
  0x32   : > { %421 = vst.msk [vmem:[#allocation2 + $0x81] sm:$0xff] %vm277_vm0, %v1730_v52  ;;  %403 = vst.msk [vmem:[#allocation2 + $0x110] sm:$0xff] %vm277_vm0, %v1722_v53  ;;  %v2221_v55 = vld [vmem:[#allocation2 + $0x200] sm:$0xff]  ;;  %v540_v7 = vld [vmem:[#allocation2 + $0x150] sm:$0xff] }
  0x33   : > { %v1870_v58 = vpack.c.bf16 %v2221_v55, %v2219_v54  ;;  %v2225_v59 = vld [vmem:[#allocation2 + $0x60] sm:$0xff]  ;;  %v638_v9 = vld [vmem:[#allocation2 + $0x151] sm:$0xff]  ;;  %1095 = vst.msk [vmem:[#allocation4 + $0x20] sm:$0xff] %vm1089_vm12, %v1930_v0  ;;  %1090 = vst.msk [vmem:[#allocation4] sm:$0xff] %vm1089_vm12, %v1930_v0 }
  0x34   : > { %651 = vrot.lane.b32.xlu0 %v635_v40, %s1935_s11  ;;  %459 = vrot.lane.b32.xlu1 %v441_v41, %s1931_s30  ;;  %436 = vst.msk [vmem:[#allocation3 + $0x30] sm:$0xff] %vm277_vm0, %v2225_v59  ;;  %v736_v10 = vld [vmem:[#allocation2 + $0xd0] sm:$0xff]  ;;  %v785_v11 = vld [vmem:[#allocation2 + $0x41] sm:$0xff] }
  0x35   : > { %v2231_v60 = vld [vmem:[#allocation2 + $0x70] sm:$0xff]  ;;  %v444_v12 = vld [vmem:[#allocation2 + $0xe0] sm:$0xff]  ;;  %1096 = vst.msk [vmem:[#allocation4 + $0x28] sm:$0x3] %vm1091_vm13, %v1930_v0  ;;  %1092 = vst.msk [vmem:[#allocation4 + $0x8] sm:$0x3] %vm1091_vm13, %v1930_v0 }
  0x36   : > { %437 = vst.msk [vmem:[#allocation3 + $0x38] sm:$0xff] %vm277_vm0, %v2231_v60  ;;  %v493_v13 = vld [vmem:[#allocation2 + $0x51] sm:$0xff]  ;;  %v541_v14 = vld [vmem:[#allocation2 + $0x160] sm:$0xff] }
  0x37   : > { %v542_v15 = vld [vmem:[#allocation2 + $0x170] sm:$0xff]  ;;  %v639_v16 = vld [vmem:[#allocation2 + $0x161] sm:$0xff]  ;;  %1093 = vst.msk [vmem:[#allocation4 + $0x10] sm:$0xff] %vm1089_vm12, %v1930_v0  ;;  %1097 = vst.msk [vmem:[#allocation4 + $0x30] sm:$0xff] %vm1089_vm12, %v1930_v0 }
  0x38   : > { %653 = vrot.lane.b32.xlu0 %v636_v51, %s1935_s11  ;;  %700 = vrot.lane.b32.xlu1 %v684_v31, %s1936_s12  ;;  %v640_v17 = vld [vmem:[#allocation2 + $0x171] sm:$0xff]  ;;  %v787_v19 = vld [vmem:[#allocation2 + $0x61] sm:$0xff]  ;;  %1094 = vst.msk [vmem:[#allocation4 + $0x18] sm:$0x3] %vm1091_vm13, %v1930_v0  ;;  %1098 = vst.msk [vmem:[#allocation4 + $0x38] sm:$0x3] %vm1091_vm13, %v1930_v0 }
  0x39   : > { %v738_v18 = vld [vmem:[#allocation2 + $0xf0] sm:$0xff]  ;;  %v446_v20 = vld [vmem:[#allocation2 + $0x100] sm:$0xff]  ;;  %1099 = vst.msk [vmem:[#allocation4 + $0x40] sm:$0xff] %vm1089_vm12, %v1930_v0  ;;  %1101 = vst.msk [vmem:[#allocation4 + $0x50] sm:$0xff] %vm1089_vm12, %v1930_v0 }
  0x3a   : > { %v495_v21 = vld [vmem:[#allocation2 + $0x71] sm:$0xff]  ;;  %v543_v22 = vld [vmem:[#allocation2 + $0x180] sm:$0xff]  ;;  %1100 = vst.msk [vmem:[#allocation4 + $0x48] sm:$0x3] %vm1091_vm13, %v1930_v0  ;;  %1102 = vst.msk [vmem:[#allocation4 + $0x58] sm:$0x3] %vm1091_vm13, %v1930_v0 }
  0x3b   : > { %v544_v23 = vld [vmem:[#allocation2 + $0x190] sm:$0xff]  ;;  %v789_v40 = vld [vmem:[#allocation2 + $0x81] sm:$0xff]  ;;  %1103 = vst.msk [vmem:[#allocation4 + $0x60] sm:$0xff] %vm1089_vm12, %v1930_v0  ;;  %1105 = vst.msk [vmem:[#allocation4 + $0x70] sm:$0xff] %vm1089_vm12, %v1930_v0 }
  0x3c   : > { %461 = vrot.lane.b32.xlu0 %v442_v56, %s1931_s30  ;;  %508 = vrot.lane.b32.xlu1 %v490_v57, %s1932_s8  ;;  %v2300_v24 = vld [vmem:[#allocation2 + $0x210] sm:$0xff]  ;;  %1104 = vst.msk [vmem:[#allocation4 + $0x68] sm:$0x3] %vm1091_vm13, %v1930_v0  ;;  %1106 = vst.msk [vmem:[#allocation4 + $0x78] sm:$0x3] %vm1091_vm13, %v1930_v0 }
  0x3d   : > { %v642_v27 = vld [vmem:[#allocation2 + $0x191] sm:$0xff]  ;;  %1107 = vst.msk [vmem:[#allocation4 + $0x80] sm:$0xff] %vm1089_vm12, %v1930_v0  ;;  %1109 = vst.msk [vmem:[#allocation4 + $0x90] sm:$0xff] %vm1089_vm12, %v1930_v0 }
  0x3e   : > { %1108 = vst.msk [vmem:[#allocation4 + $0x88] sm:$0x3] %vm1091_vm13, %v1930_v0  ;;  %1110 = vst.msk [vmem:[#allocation4 + $0x98] sm:$0x3] %vm1091_vm13, %v1930_v0 }
  0x40   : > { %702 = vrot.lane.b32.xlu0 %v685_v33, %s1936_s12  ;;  %749 = vrot.lane.b32.xlu1 %v2150_v25, %s1937_s17  ;;  %v2302_v25 = vld [vmem:[#allocation2 + $0x220] sm:$0xff] }
  0x41   : > { %v691_v33 = vld [vmem:[#allocation2 + $0x80] sm:$0xff] }
  0x44   : > { %510 = vrot.lane.b32.xlu0 %v491_v1, %s1932_s8  ;;  %557 = vrot.lane.b32.xlu1 %v539_v2, %s1933_s9 }
  0x48   : > { %751 = vrot.lane.b32.xlu0 %v441_v41, %s1937_s17  ;;  %798 = vrot.lane.b32.xlu1 %v2152_v26, %s1938_s26  ;;  %v641_v26 = vld [vmem:[#allocation2 + $0x181] sm:$0xff] }
  0x4c   : > { %559 = vrot.lane.b32.xlu0 %v540_v7, %s1933_s9  ;;  %606 = vrot.lane.b32.xlu1 %v2170_v34, %s1934_s10  ;;  %v1874_v34 = vpack.c.bf16 %v2302_v25, %v2300_v24 }
  0x50   : > { %800 = vrot.lane.b32.xlu0 %v490_v57, %s1938_s26  ;;  %608 = vrot.lane.b32.xlu1 %v2172_v35, %s1934_s10  ;;  %v1438_v35 = vld [vmem:[#allocation4 + $0x91] sm:$0xff] }
  0x54   : > { %655 = vrot.lane.b32.xlu0 %v637_v8, %s1935_s11  ;;  %657 = vrot.lane.b32.xlu1 %v638_v9, %s1935_s11 }
  0x58   : > { %704 = vrot.lane.b32.xlu0 %v2177_v37, %s1936_s12  ;;  %706 = vrot.lane.b32.xlu1 %v2179_v38, %s1936_s12  ;;  %v740_v37 = vld [vmem:[#allocation2 + $0x110] sm:$0xff] }
  0x5c   : > { %753 = vrot.lane.b32.xlu0 %v442_v56, %s1937_s17  ;;  %755 = vrot.lane.b32.xlu1 %v736_v10, %s1937_s17 }
  0x60   : > { %802 = vrot.lane.b32.xlu0 %v491_v1, %s1938_s26  ;;  %463 = vrot.lane.b32.xlu1 %v736_v10, %s1931_s30 }
  0x64   : > { %804 = vrot.lane.b32.xlu0 %v785_v11, %s1938_s26  ;;  %465 = vrot.lane.b32.xlu1 %v444_v12, %s1931_s30 }
  0x68   : > { %512 = vrot.lane.b32.xlu0 %v785_v11, %s1932_s8  ;;  %514 = vrot.lane.b32.xlu1 %v493_v13, %s1932_s8 }
  0x6c   : > { %561 = vrot.lane.b32.xlu0 %v541_v14, %s1933_s9  ;;  %563 = vrot.lane.b32.xlu1 %v542_v15, %s1933_s9 }
  0x70   : > { %610 = vrot.lane.b32.xlu0 %v2219_v54, %s1934_s10  ;;  %612 = vrot.lane.b32.xlu1 %v2221_v55, %s1934_s10  ;;  %v1487_v55 = vld [vmem:[#allocation4 + $0x92] sm:$0xff] }
  0x74   : > { %659 = vrot.lane.b32.xlu0 %v639_v16, %s1935_s11  ;;  %661 = vrot.lane.b32.xlu1 %v640_v17, %s1935_s11 }
  0x78   : > { %708 = vrot.lane.b32.xlu0 %v2191_v42, %s1936_s12  ;;  %710 = vrot.lane.b32.xlu1 %v2225_v59, %s1936_s12 }
  0x7c   : > { %757 = vrot.lane.b32.xlu0 %v444_v12, %s1937_s17  ;;  %759 = vrot.lane.b32.xlu1 %v738_v18, %s1937_s17 }
  0x80   : > { %806 = vrot.lane.b32.xlu0 %v493_v13, %s1938_s26  ;;  %467 = vrot.lane.b32.xlu1 %v738_v18, %s1931_s30  ;;  %v456_v28 = vpop.permute.xlu0 %455 }
  0x81   : > { %480 = vst.msk [vmem:[#allocation3] sm:$0xff] %vm479_vm3, %v456_v28 }
  0x84   : > { %808 = vrot.lane.b32.xlu0 %v787_v19, %s1938_s26  ;;  %469 = vrot.lane.b32.xlu1 %v446_v20, %s1931_s30  ;;  %s1940_s30 = smov 56  }
  0x88   : > { %516 = vrot.lane.b32.xlu0 %v787_v19, %s1932_s8  ;;  %518 = vrot.lane.b32.xlu1 %v495_v21, %s1932_s8 }
  0x8c   : > { %565 = vrot.lane.b32.xlu0 %v543_v22, %s1933_s9  ;;  %567 = vrot.lane.b32.xlu1 %v544_v23, %s1933_s9  ;;  %s1941_s9 = smov 64  }
  0x90   : > { %614 = vrot.lane.b32.xlu0 %v2300_v24, %s1934_s10  ;;  %616 = vrot.lane.b32.xlu1 %v2302_v25, %s1934_s10 }
  0x91   : > { %v505_v31 = vpop.permute.xlu1 %504 }
  0x92   : > { %529 = vst.msk [vmem:[#allocation3] sm:$0xff] %vm528_vm4, %v505_v31 }
  0x94   : > { %663 = vrot.lane.b32.xlu0 %v641_v26, %s1935_s11  ;;  %665 = vrot.lane.b32.xlu1 %v642_v27, %s1935_s11  ;;  %s1942_s11 = smov 40  }
  0x98   : > { %712 = vrot.lane.b32.xlu0 %v2231_v60, %s1936_s12  ;;  %714 = vrot.lane.b32.xlu1 %v691_v33, %s1936_s12 }
  0x9a   : > { %v458_v38 = vpop.permute.xlu0 %457  ;;  %v507_v39 = vpop.permute.xlu1 %506 }
  0x9b   : > { %481 = vst.msk [vmem:[#allocation3 + $0x8] sm:$0xff] %vm479_vm3, %v458_v38 }
  0x9c   : > { %530 = vst.msk [vmem:[#allocation3 + $0x8] sm:$0xff] %vm528_vm4, %v507_v39  ;;  %761 = vrot.lane.b32.xlu0 %v446_v20, %s1937_s17  ;;  %763 = vrot.lane.b32.xlu1 %v740_v37, %s1937_s17 }
  0x9e   : > { %v554_v41 = vpop.permute.xlu0 %553  ;;  %v556_v42 = vpop.permute.xlu1 %555 }
  0x9f   : > { %578 = vst.msk [vmem:[#allocation3] sm:$0xff] %vm577_vm5, %v554_v41  ;;  %579 = vst.msk [vmem:[#allocation3 + $0x8] sm:$0xff] %vm577_vm5, %v556_v42 }
  0xa0   : > { %810 = vrot.lane.b32.xlu0 %v495_v21, %s1938_s26  ;;  %812 = vrot.lane.b32.xlu1 %v789_v40, %s1938_s26 }
  0xa2   : > { %v603_v43 = vpop.permute.xlu0 %602  ;;  %v605_v44 = vpop.permute.xlu1 %604 }
  0xa3   : > { %627 = vst.msk [vmem:[#allocation3] sm:$0xff] %vm626_vm6, %v603_v43  ;;  %628 = vst.msk [vmem:[#allocation3 + $0x8] sm:$0xff] %vm626_vm6, %v605_v44 }
  0xa6   : > { %v652_v45 = vpop.permute.xlu0 %651  ;;  %v460_v46 = vpop.permute.xlu1 %459 }
  0xa7   : > { %676 = vst.msk [vmem:[#allocation3] sm:$0xff] %vm675_vm7, %v652_v45 }
  0xa8   : > { %482 = vst.msk [vmem:[#allocation3 + $0x10] sm:$0xff] %vm479_vm3, %v460_v46 }
  0xaa   : > { %v654_v47 = vpop.permute.xlu0 %653  ;;  %v701_v48 = vpop.permute.xlu1 %700 }
  0xab   : > { %677 = vst.msk [vmem:[#allocation3 + $0x8] sm:$0xff] %vm675_vm7, %v654_v47 }
  0xac   : > { %725 = vst.msk [vmem:[#allocation3] sm:$0xff] %vm724_vm8, %v701_v48 }
  0xae   : > { %v462_v49 = vpop.permute.xlu0 %461  ;;  %v509_v50 = vpop.permute.xlu1 %508 }
  0xaf   : > { %483 = vst.msk [vmem:[#allocation3 + $0x18] sm:$0xff] %vm479_vm3, %v462_v49 }
  0xb0   : > { %531 = vst.msk [vmem:[#allocation3 + $0x10] sm:$0xff] %vm528_vm4, %v509_v50 }
  0xb2   : > { %v703_v51 = vpop.permute.xlu0 %702  ;;  %v750_v52 = vpop.permute.xlu1 %749 }
  0xb3   : > { %726 = vst.msk [vmem:[#allocation3 + $0x8] sm:$0xff] %vm724_vm8, %v703_v51 }
  0xb4   : > { %774 = vst.msk [vmem:[#allocation3] sm:$0xff] %vm773_vm9, %v750_v52 }
  0xb6   : > { %v511_v53 = vpop.permute.xlu0 %510  ;;  %v558_v56 = vpop.permute.xlu1 %557 }
  0xb7   : > { %532 = vst.msk [vmem:[#allocation3 + $0x18] sm:$0xff] %vm528_vm4, %v511_v53 }
  0xb8   : > { %580 = vst.msk [vmem:[#allocation3 + $0x10] sm:$0xff] %vm577_vm5, %v558_v56 }
  0xba   : > { %v752_v57 = vpop.permute.xlu0 %751  ;;  %v799_v59 = vpop.permute.xlu1 %798 }
  0xbb   : > { %775 = vst.msk [vmem:[#allocation3 + $0x8] sm:$0xff] %vm773_vm9, %v752_v57 }
  0xbc   : > { %823 = vst.msk [vmem:[#allocation3] sm:$0xff] %vm822_vm10, %v799_v59 }
  0xbe   : > { %v560_v60 = vpop.permute.xlu0 %559  ;;  %v607_v61 = vpop.permute.xlu1 %606 }
  0xbf   : > { %581 = vst.msk [vmem:[#allocation3 + $0x18] sm:$0xff] %vm577_vm5, %v560_v60  ;;  %v1136_v60 = vld [vmem:[#allocation4 + $0x1] sm:$0xff] }
  0xc0   : > { %629 = vst.msk [vmem:[#allocation3 + $0x10] sm:$0xff] %vm626_vm6, %v607_v61  ;;  %1152 = vrot.lane.b32.xlu0 %v1136_v60, %s1932_s8  ;;  %v1389_v61 = vld [vmem:[#allocation4 + $0x90] sm:$0xff] }
  0xc1   : > { %1412 = vrot.lane.b32.xlu1 %v1389_v61, %s1939_s27 }
  0xc2   : > { %v801_v62 = vpop.permute.xlu0 %800  ;;  %v609_v63 = vpop.permute.xlu1 %608 }
  0xc3   : > { %v831_v1 = vld [vmem:[#allocation3] sm:$0xff]  ;;  %824 = vst.msk [vmem:[#allocation3 + $0x8] sm:$0xff] %vm822_vm10, %v801_v62 }
  0xc4   : > { %630 = vst.msk [vmem:[#allocation3 + $0x18] sm:$0xff] %vm626_vm6, %v609_v63  ;;  %1803 = vmatprep.mubr.msk.f32.mxu0 %vm851_vm11, %v831_v1  ;;  %v1185_v62 = vld [vmem:[#allocation4 + $0x2] sm:$0xff] }
  0xc5   : > { %1201 = vrot.lane.b32.xlu0 %v1185_v62, %s1934_s10  ;;  %v1120_v63 = vld [vmem:[#allocation4] sm:$0xff] }
  0xc6   : > { %v656_v2 = vpop.permute.xlu0 %655  ;;  %v658_v3 = vpop.permute.xlu1 %657  ;;  %1128 = vst.msk [vmem:[#allocation5] sm:$0xff] %vm1089_vm12, %v1120_v63 }
  0xc7   : > { %678 = vst.msk [vmem:[#allocation3 + $0x10] sm:$0xff] %vm675_vm7, %v656_v2  ;;  %679 = vst.msk [vmem:[#allocation3 + $0x18] sm:$0xff] %vm675_vm7, %v658_v3  ;;  %v2438_v3 = vld [vmem:[%s2661_s2] ss:$0 sm:$0xff] }
  0xca   : > { %v705_v4 = vpop.permute.xlu0 %704  ;;  %v832_v5 = vld [vmem:[#allocation3 + $0x8] sm:$0xff]  ;;  %v707_v6 = vpop.permute.xlu1 %706 }
  0xcb   : > { %727 = vst.msk [vmem:[#allocation3 + $0x10] sm:$0xff] %vm724_vm8, %v705_v4  ;;  %1804 = vmatmul.mubr.msk.f32.vlgmr.msra.gmra.mrb[0].mxu0 %vm851_vm11, %v832_v5  ;;  %728 = vst.msk [vmem:[#allocation3 + $0x18] sm:$0xff] %vm724_vm8, %v707_v6 }
  0xce   : > { %v754_v7 = vpop.permute.xlu0 %753  ;;  %v756_v8 = vpop.permute.xlu1 %755 }
  0xcf   : > { %776 = vst.msk [vmem:[#allocation3 + $0x10] sm:$0xff] %vm773_vm9, %v754_v7  ;;  %777 = vst.msk [vmem:[#allocation3 + $0x18] sm:$0xff] %vm773_vm9, %v756_v8 }
  0xd2   : > { %v803_v9 = vpop.permute.xlu0 %802  ;;  %v464_v10 = vpop.permute.xlu1 %463 }
  0xd3   : > { %825 = vst.msk [vmem:[#allocation3 + $0x10] sm:$0xff] %vm822_vm10, %v803_v9 }
  0xd4   : > { %484 = vst.msk [vmem:[#allocation3 + $0x20] sm:$0xff] %vm479_vm3, %v464_v10 }
  0xd6   : > { %v805_v11 = vpop.permute.xlu0 %804  ;;  %v466_v12 = vpop.permute.xlu1 %465 }
  0xd7   : > { %826 = vst.msk [vmem:[#allocation3 + $0x18] sm:$0xff] %vm822_vm10, %v805_v11 }
  0xd8   : > { %485 = vst.msk [vmem:[#allocation3 + $0x28] sm:$0xff] %vm479_vm3, %v466_v12 }
  0xda   : > { %v513_v13 = vpop.permute.xlu0 %512  ;;  %v833_v14 = vld [vmem:[#allocation3 + $0x10] sm:$0xff]  ;;  %v515_v15 = vpop.permute.xlu1 %514 }
  0xdb   : > { %533 = vst.msk [vmem:[#allocation3 + $0x20] sm:$0xff] %vm528_vm4, %v513_v13  ;;  %1806 = vmatprep.mubr.msk.f32.mxu0 %vm851_vm11, %v833_v14  ;;  %534 = vst.msk [vmem:[#allocation3 + $0x28] sm:$0xff] %vm528_vm4, %v515_v15 }
  0xde   : > { %v562_v16 = vpop.permute.xlu0 %561  ;;  %v834_v17 = vld [vmem:[#allocation3 + $0x18] sm:$0xff]  ;;  %v564_v18 = vpop.permute.xlu1 %563 }
  0xdf   : > { %582 = vst.msk [vmem:[#allocation3 + $0x20] sm:$0xff] %vm577_vm5, %v562_v16  ;;  %1807 = vmatmul.mubr.msk.f32.gmra.mrb[2].mxu0 %vm851_vm11, %v834_v17  ;;  %583 = vst.msk [vmem:[#allocation3 + $0x28] sm:$0xff] %vm577_vm5, %v564_v18 }
  0xe2   : > { %v611_v19 = vpop.permute.xlu0 %610  ;;  %v613_v20 = vpop.permute.xlu1 %612 }
  0xe3   : > { %631 = vst.msk [vmem:[#allocation3 + $0x20] sm:$0xff] %vm626_vm6, %v611_v19  ;;  %632 = vst.msk [vmem:[#allocation3 + $0x28] sm:$0xff] %vm626_vm6, %v613_v20 }
  0xe6   : > { %v660_v21 = vpop.permute.xlu0 %659  ;;  %v662_v22 = vpop.permute.xlu1 %661 }
  0xe7   : > { %680 = vst.msk [vmem:[#allocation3 + $0x20] sm:$0xff] %vm675_vm7, %v660_v21  ;;  %681 = vst.msk [vmem:[#allocation3 + $0x28] sm:$0xff] %vm675_vm7, %v662_v22 }
  0xea   : > { %v709_v23 = vpop.permute.xlu0 %708  ;;  %v711_v26 = vpop.permute.xlu1 %710 }
  0xeb   : > { %729 = vst.msk [vmem:[#allocation3 + $0x20] sm:$0xff] %vm724_vm8, %v709_v23  ;;  %730 = vst.msk [vmem:[#allocation3 + $0x28] sm:$0xff] %vm724_vm8, %v711_v26 }
  0xee   : > { %v758_v27 = vpop.permute.xlu0 %757  ;;  %v760_v28 = vpop.permute.xlu1 %759 }
  0xef   : > { %778 = vst.msk [vmem:[#allocation3 + $0x20] sm:$0xff] %vm773_vm9, %v758_v27  ;;  %779 = vst.msk [vmem:[#allocation3 + $0x28] sm:$0xff] %vm773_vm9, %v760_v28 }
  0xf2   : > { %v807_v31 = vpop.permute.xlu0 %806  ;;  %v468_v33 = vpop.permute.xlu1 %467 }
  0xf3   : > { %827 = vst.msk [vmem:[#allocation3 + $0x20] sm:$0xff] %vm822_vm10, %v807_v31  ;;  %v1943_v31 = vmov 0.0|0.0  }
  0xf4   : > { %486 = vst.msk [vmem:[#allocation3 + $0x30] sm:$0xff] %vm479_vm3, %v468_v33  ;;  %1877 = vmatprep.subr.bf16.mxu1 %v1943_v31  ;;  %1861 = vmatprep.subr.bf16.mxu0 %v1943_v31 }
  0xf5   : > { %1864 = vmatpush3.bf16.xpose.msk.msra.mxu0 %vm2511_vm1, %v1862_v32 }
  0xf6   : > { %v809_v37 = vpop.permute.xlu0 %808  ;;  %v470_v38 = vpop.permute.xlu1 %469  ;;  %1865 = vmatprep.subr.bf16.mxu0 %v1943_v31 }
  0xf7   : > { %828 = vst.msk [vmem:[#allocation3 + $0x28] sm:$0xff] %vm822_vm10, %v809_v37 }
  0xf8   : > { %487 = vst.msk [vmem:[#allocation3 + $0x38] sm:$0xff] %vm479_vm3, %v470_v38  ;;  %vm1323_vm3 = vcmask 326912  }
  0xfa   : > { %v835_v39 = vld [vmem:[#allocation3 + $0x20] sm:$0xff]  ;;  %v517_v40 = vpop.permute.xlu0 %516  ;;  %v519_v41 = vpop.permute.xlu1 %518 }
  0xfb   : > { %1809 = vmatprep.mubr.msk.f32.mxu0 %vm851_vm11, %v835_v39  ;;  %535 = vst.msk [vmem:[#allocation3 + $0x30] sm:$0xff] %vm528_vm4, %v517_v40  ;;  %536 = vst.msk [vmem:[#allocation3 + $0x38] sm:$0xff] %vm528_vm4, %v519_v41  ;;  %vm1372_vm4 = vcmask 392512  }
  0xfd   : > { %1868 = vmatpush3.bf16.xpose.msk.msra.mxu0 %vm2511_vm1, %v1866_v36 }
  0xfe   : > { %v836_v42 = vld [vmem:[#allocation3 + $0x28] sm:$0xff]  ;;  %v566_v43 = vpop.permute.xlu0 %565  ;;  %v568_v44 = vpop.permute.xlu1 %567  ;;  %1869 = vmatprep.subr.bf16.mxu0 %v1943_v31 }
  0xff   : > { %1810 = vmatmul.mubr.msk.f32.gmra.mrb[4].mxu0 %vm851_vm11, %v836_v42  ;;  %584 = vst.msk [vmem:[#allocation3 + $0x30] sm:$0xff] %vm577_vm5, %v566_v43  ;;  %585 = vst.msk [vmem:[#allocation3 + $0x38] sm:$0xff] %vm577_vm5, %v568_v44  ;;  %vm1422_vm5 = vcmask 458112  }
 0x102   : > { %v615_v45 = vpop.permute.xlu0 %614  ;;  %v617_v46 = vpop.permute.xlu1 %616 }
 0x103   : > { %633 = vst.msk [vmem:[#allocation3 + $0x30] sm:$0xff] %vm626_vm6, %v615_v45  ;;  %634 = vst.msk [vmem:[#allocation3 + $0x38] sm:$0xff] %vm626_vm6, %v617_v46  ;;  %vm1471_vm6 = vcmask 523712  }
 0x105   : > { %1872 = vmatpush3.bf16.xpose.msk.msra.mxu0 %vm2511_vm1, %v1870_v58  ;;  %v993_v58 = vld [vmem:[%s2664_s5] sm:$0xff] }
 0x106   : > { %v664_v47 = vpop.permute.xlu0 %663  ;;  %v666_v48 = vpop.permute.xlu1 %665  ;;  %1873 = vmatprep.subr.bf16.mxu0 %v1943_v31 }
 0x107   : > { %682 = vst.msk [vmem:[#allocation3 + $0x30] sm:$0xff] %vm675_vm7, %v664_v47  ;;  %683 = vst.msk [vmem:[#allocation3 + $0x38] sm:$0xff] %vm675_vm7, %v666_v48  ;;  %vm1520_vm7 = vcmask 589312  }
 0x10a   : > { %v713_v49 = vpop.permute.xlu0 %712  ;;  %v715_v50 = vpop.permute.xlu1 %714 }
 0x10b   : > { %731 = vst.msk [vmem:[#allocation3 + $0x30] sm:$0xff] %vm724_vm8, %v713_v49  ;;  %732 = vst.msk [vmem:[#allocation3 + $0x38] sm:$0xff] %vm724_vm8, %v715_v50  ;;  %vm1544_vm8 = vcmask 588800  }
 0x10d   : > { %1876 = vmatpush3.bf16.xpose.msk.msra.mxu0 %vm2511_vm1, %v1874_v34 }
 0x10e   : > { %v762_v51 = vpop.permute.xlu0 %761  ;;  %v764_v52 = vpop.permute.xlu1 %763 }
 0x10f   : > { %780 = vst.msk [vmem:[#allocation3 + $0x30] sm:$0xff] %vm773_vm9, %v762_v51  ;;  %781 = vst.msk [vmem:[#allocation3 + $0x38] sm:$0xff] %vm773_vm9, %v764_v52 }
 0x110   : > { %vm2588_vm9 = vmpackc.low %vm1544_vm8, %vm1544_vm8 }
 0x112   : > { %v811_v53 = vpop.permute.xlu0 %810  ;;  %v813_v56 = vpop.permute.xlu1 %812 }
 0x113   : > { %829 = vst.msk [vmem:[#allocation3 + $0x30] sm:$0xff] %vm822_vm10, %v811_v53  ;;  %830 = vst.msk [vmem:[#allocation3 + $0x38] sm:$0xff] %vm822_vm10, %v813_v56  ;;  %vm1644_vm10 = vcmask 523264  }
 0x11a   : > { %v837_v57 = vld [vmem:[#allocation3 + $0x30] sm:$0xff]  ;;  %v838_v59 = vld [vmem:[#allocation3 + $0x38] sm:$0xff] }
 0x11b   : > { %1812 = vmatprep.mubr.msk.f32.mxu0 %vm851_vm11, %v837_v57 }
 0x11c   : > { %1813 = vmatmul.mubr.msk.f32.gmra.mrb[6].mxu0 %vm851_vm11, %v838_v59 }
 0x11d   : > { %1831 = vmatprep.mubr.msk.f32.mxu0 %vm1944_vm2, %v1930_v0 }
 0x120   : > { %1832 = vmatmul.mubr.msk.f32.vlgmr.msra.gmra.mrb[8].mxu0 %vm277_vm0, %v993_v58  ;;  %vm1274_vm0 = vcmask 261312  }
 0x132   : > { %v1153_v1 = vpop.permute.xlu0 %1152 }
 0x133   : > { %1177 = vst.msk [vmem:[#allocation5] sm:$0xff] %vm1176_vm14, %v1153_v1  ;;  %v2545_v32 = vpop.permute.xlu1 %1412 }
 0x137   : > { %v1202_v2 = vpop.permute.xlu0 %1201 }
 0x138   : > { %1226 = vst.msk [vmem:[#allocation5] sm:$0xff] %vm1225_vm15, %v1202_v2  ;;  %v994_v2 = vld [vmem:[%s2665_s6] sm:$0xff] }
 0x19e   : > { %v1805_v4 = vpop.f32.mrb[0].mxu0 }
 0x19f   : > { %v952_v5 = vadd.f32 %v1805_v4, %v2438_v3  ;;  %v946_v6 = vpop.f32.mrb[1].mxu0  ;;  %v1945_v4 = vmov 0  }
 0x1a0   : > { %v947_v7 = vadd.f32 %v2438_v3, %v946_v6  ;;  %1920 = vset.pattern.permute.xlu0 %v1945_v4  ;;  %1921 = vset.pattern.permute.xlu1 %v1945_v4 }
 0x1a1   : > { %v986_v8 = vmax.f32 %v952_v5, 0.0 }
 0x1a2   : > { %v985_v9 = vmax.f32 %v947_v7, 0.0 }
 0x1a3   : > { %1113 = vst.msk [vmem:[#allocation4 + $0x21] sm:$0xff] %vm1089_vm12, %v986_v8 }
 0x1a4   : > { %1112 = vst.msk [vmem:[#allocation4 + $0x11] sm:$0xff] %vm1089_vm12, %v985_v9 }
 0x1aa   : > { %v1382_v10 = vld [vmem:[#allocation4 + $0x20] sm:$0xff] }
 0x1ab   : > { %1398 = vrot.lane.b32.xlu0 %v1382_v10, %s1939_s27  ;;  %1252 = vrot.lane.b32.xlu1 %v1382_v10, %s1936_s12  ;;  %v1234_v11 = vld [vmem:[#allocation4 + $0x10] sm:$0xff]  ;;  %1130 = vst.msk [vmem:[#allocation5 + $0x10] sm:$0xff] %vm1089_vm12, %v1382_v10  ;;  %v1431_v12 = vld [vmem:[#allocation4 + $0x21] sm:$0xff] }
 0x1ac   : > { %1129 = vst.msk [vmem:[#allocation5 + $0x8] sm:$0xff] %vm1089_vm12, %v1234_v11  ;;  %v1480_v14 = vld [vmem:[#allocation4 + $0x22] sm:$0xff]  ;;  %v1137_v20 = vld [vmem:[#allocation4 + $0x11] sm:$0xff] }
 0x1ad   : > { %v1186_v21 = vld [vmem:[#allocation4 + $0x12] sm:$0xff] }
 0x1af   : > { %1447 = vrot.lane.b32.xlu0 %v1431_v12, %s1940_s30  ;;  %1301 = vrot.lane.b32.xlu1 %v1431_v12, %s1938_s26 }
 0x1b2   : > { %v1808_v13 = vpop.f32.mrb[2].mxu0 }
 0x1b3   : > { %v962_v15 = vadd.f32 %v1808_v13, %v2438_v3  ;;  %1496 = vrot.lane.b32.xlu0 %v1480_v14, %s1941_s9  ;;  %1350 = vrot.lane.b32.xlu1 %v1480_v14, %s1942_s11  ;;  %v956_v16 = vpop.f32.mrb[3].mxu0 }
 0x1b4   : > { %v957_v17 = vadd.f32 %v2438_v3, %v956_v16 }
 0x1b5   : > { %v988_v18 = vmax.f32 %v962_v15, 0.0 }
 0x1b6   : > { %v987_v19 = vmax.f32 %v957_v17, 0.0 }
 0x1b7   : > { %1115 = vst.msk [vmem:[#allocation4 + $0x41] sm:$0xff] %vm1089_vm12, %v988_v18  ;;  %1156 = vrot.lane.b32.xlu0 %v1431_v12, %s1932_s8  ;;  %1154 = vrot.lane.b32.xlu1 %v1137_v20, %s1932_s8 }
 0x1b8   : > { %1114 = vst.msk [vmem:[#allocation4 + $0x31] sm:$0xff] %vm1089_vm12, %v987_v19 }
 0x1bb   : > { %1205 = vrot.lane.b32.xlu0 %v1480_v14, %s1934_s10  ;;  %1203 = vrot.lane.b32.xlu1 %v1186_v21, %s1934_s10 }
 0x1be   : > { %v1237_v22 = vld [vmem:[#allocation4 + $0x40] sm:$0xff] }
 0x1bf   : > { %1250 = vrot.lane.b32.xlu0 %v1234_v11, %s1936_s12  ;;  %1256 = vrot.lane.b32.xlu1 %v1237_v22, %s1936_s12  ;;  %v1383_v23 = vld [vmem:[#allocation4 + $0x30] sm:$0xff]  ;;  %1132 = vst.msk [vmem:[#allocation5 + $0x20] sm:$0xff] %vm1089_vm12, %v1237_v22  ;;  %v1286_v26 = vld [vmem:[#allocation4 + $0x41] sm:$0xff] }
 0x1c0   : > { %1131 = vst.msk [vmem:[#allocation5 + $0x18] sm:$0xff] %vm1089_vm12, %v1383_v23  ;;  %v1335_v27 = vld [vmem:[#allocation4 + $0x42] sm:$0xff]  ;;  %v1432_v28 = vld [vmem:[#allocation4 + $0x31] sm:$0xff] }
 0x1c1   : > { %v1481_v37 = vld [vmem:[#allocation4 + $0x32] sm:$0xff] }
 0x1c3   : > { %1299 = vrot.lane.b32.xlu0 %v1137_v20, %s1938_s26  ;;  %1305 = vrot.lane.b32.xlu1 %v1286_v26, %s1938_s26 }
 0x1c7   : > { %1348 = vrot.lane.b32.xlu0 %v1186_v21, %s1942_s11  ;;  %1354 = vrot.lane.b32.xlu1 %v1335_v27, %s1942_s11 }
 0x1cb   : > { %1402 = vrot.lane.b32.xlu0 %v1237_v22, %s1939_s27  ;;  %1400 = vrot.lane.b32.xlu1 %v1383_v23, %s1939_s27 }
 0x1cf   : > { %1451 = vrot.lane.b32.xlu0 %v1286_v26, %s1940_s30  ;;  %1449 = vrot.lane.b32.xlu1 %v1432_v28, %s1940_s30 }
 0x1d2   : > { %v1811_v33 = vpop.f32.mrb[4].mxu0 }
 0x1d3   : > { %v972_v38 = vadd.f32 %v1811_v33, %v2438_v3  ;;  %1500 = vrot.lane.b32.xlu0 %v1335_v27, %s1941_s9  ;;  %1498 = vrot.lane.b32.xlu1 %v1481_v37, %s1941_s9  ;;  %v966_v39 = vpop.f32.mrb[5].mxu0 }
 0x1d4   : > { %v967_v40 = vadd.f32 %v2438_v3, %v966_v39 }
 0x1d5   : > { %v990_v41 = vmax.f32 %v972_v38, 0.0 }
 0x1d6   : > { %v989_v42 = vmax.f32 %v967_v40, 0.0 }
 0x1d7   : > { %1117 = vst.msk [vmem:[#allocation4 + $0x61] sm:$0xff] %vm1089_vm12, %v990_v41  ;;  %1160 = vrot.lane.b32.xlu0 %v1286_v26, %s1932_s8  ;;  %1158 = vrot.lane.b32.xlu1 %v1432_v28, %s1932_s8 }
 0x1d8   : > { %1116 = vst.msk [vmem:[#allocation4 + $0x51] sm:$0xff] %vm1089_vm12, %v989_v42 }
 0x1db   : > { %1209 = vrot.lane.b32.xlu0 %v1335_v27, %s1934_s10  ;;  %1207 = vrot.lane.b32.xlu1 %v1481_v37, %s1934_s10 }
 0x1de   : > { %v1239_v43 = vld [vmem:[#allocation4 + $0x60] sm:$0xff] }
 0x1df   : > { %1254 = vrot.lane.b32.xlu0 %v1383_v23, %s1936_s12  ;;  %1260 = vrot.lane.b32.xlu1 %v1239_v43, %s1936_s12  ;;  %v1385_v44 = vld [vmem:[#allocation4 + $0x50] sm:$0xff]  ;;  %1134 = vst.msk [vmem:[#allocation5 + $0x30] sm:$0xff] %vm1089_vm12, %v1239_v43  ;;  %v1288_v45 = vld [vmem:[#allocation4 + $0x61] sm:$0xff] }
 0x1e0   : > { %1133 = vst.msk [vmem:[#allocation5 + $0x28] sm:$0xff] %vm1089_vm12, %v1385_v44  ;;  %v1337_v46 = vld [vmem:[#allocation4 + $0x62] sm:$0xff]  ;;  %v1434_v47 = vld [vmem:[#allocation4 + $0x51] sm:$0xff] }
 0x1e1   : > { %v1483_v53 = vld [vmem:[#allocation4 + $0x52] sm:$0xff] }
 0x1e3   : > { %1303 = vrot.lane.b32.xlu0 %v1432_v28, %s1938_s26  ;;  %1309 = vrot.lane.b32.xlu1 %v1288_v45, %s1938_s26 }
 0x1e7   : > { %1352 = vrot.lane.b32.xlu0 %v1481_v37, %s1942_s11  ;;  %1358 = vrot.lane.b32.xlu1 %v1337_v46, %s1942_s11 }
 0x1eb   : > { %1406 = vrot.lane.b32.xlu0 %v1239_v43, %s1939_s27  ;;  %1404 = vrot.lane.b32.xlu1 %v1385_v44, %s1939_s27 }
 0x1ef   : > { %1455 = vrot.lane.b32.xlu0 %v1288_v45, %s1940_s30  ;;  %1453 = vrot.lane.b32.xlu1 %v1434_v47, %s1940_s30  ;;  %v1814_v48 = vpop.f32.mrb[6].mxu0 }
 0x1f0   : > { %v982_v49 = vadd.f32 %v1814_v48, %v2438_v3  ;;  %v976_v50 = vpop.f32.mrb[7].mxu0 }
 0x1f1   : > { %v977_v51 = vadd.f32 %v2438_v3, %v976_v50  ;;  %v1538_v3 = vld [vmem:[%s2663_s4] sm:$0xff] }
 0x1f2   : > { %v992_v52 = vmax.f32 %v982_v49, 0.0 }
 0x1f3   : > { %v991_v56 = vmax.f32 %v977_v51, 0.0  ;;  %1504 = vrot.lane.b32.xlu0 %v1337_v46, %s1941_s9  ;;  %1502 = vrot.lane.b32.xlu1 %v1483_v53, %s1941_s9 }
 0x1f4   : > { %1119 = vst.msk [vmem:[#allocation4 + $0x81] sm:$0xff] %vm1089_vm12, %v992_v52 }
 0x1f5   : > { %1118 = vst.msk [vmem:[#allocation4 + $0x71] sm:$0xff] %vm1089_vm12, %v991_v56 }
 0x1f7   : > { %1164 = vrot.lane.b32.xlu0 %v1288_v45, %s1932_s8  ;;  %1162 = vrot.lane.b32.xlu1 %v1434_v47, %s1932_s8 }
 0x1fb   : > { %1213 = vrot.lane.b32.xlu0 %v1337_v46, %s1934_s10  ;;  %1211 = vrot.lane.b32.xlu1 %v1483_v53, %s1934_s10  ;;  %v1241_v57 = vld [vmem:[#allocation4 + $0x80] sm:$0xff] }
 0x1fc   : > { %v1387_v59 = vld [vmem:[#allocation4 + $0x70] sm:$0xff]  ;;  %v1290_v60 = vld [vmem:[#allocation4 + $0x81] sm:$0xff] }
 0x1fd   : > { %1135 = vst.msk [vmem:[#allocation5 + $0x38] sm:$0xff] %vm1089_vm12, %v1387_v59  ;;  %v1339_v62 = vld [vmem:[#allocation4 + $0x82] sm:$0xff]  ;;  %v1436_v29 = vld [vmem:[#allocation4 + $0x71] sm:$0xff] }
 0x1fe   : > { %v1485_v30 = vld [vmem:[#allocation4 + $0x72] sm:$0xff] }
 0x1ff   : > { %1258 = vrot.lane.b32.xlu0 %v1385_v44, %s1936_s12  ;;  %1264 = vrot.lane.b32.xlu1 %v1241_v57, %s1936_s12 }
 0x203   : > { %1307 = vrot.lane.b32.xlu0 %v1434_v47, %s1938_s26  ;;  %1313 = vrot.lane.b32.xlu1 %v1290_v60, %s1938_s26 }
 0x207   : > { %1356 = vrot.lane.b32.xlu0 %v1483_v53, %s1942_s11  ;;  %1362 = vrot.lane.b32.xlu1 %v1339_v62, %s1942_s11 }
 0x20b   : > { %1410 = vrot.lane.b32.xlu0 %v1241_v57, %s1939_s27  ;;  %1408 = vrot.lane.b32.xlu1 %v1387_v59, %s1939_s27 }
 0x20f   : > { %1459 = vrot.lane.b32.xlu0 %v1290_v60, %s1940_s30  ;;  %1457 = vrot.lane.b32.xlu1 %v1436_v29, %s1940_s30 }
 0x213   : > { %1506 = vrot.lane.b32.xlu1 %v1485_v30, %s1941_s9  ;;  %1262 = vrot.lane.b32.xlu0 %v1387_v59, %s1936_s12 }
 0x217   : > { %1311 = vrot.lane.b32.xlu0 %v1436_v29, %s1938_s26  ;;  %1166 = vrot.lane.b32.xlu1 %v1436_v29, %s1932_s8 }
 0x21b   : > { %1360 = vrot.lane.b32.xlu0 %v1485_v30, %s1942_s11  ;;  %1215 = vrot.lane.b32.xlu1 %v1485_v30, %s1934_s10 }
 0x21d   : > { %v1253_v36 = vpop.permute.xlu1 %1252  ;;  %v1399_v54 = vpop.permute.xlu0 %1398 }
 0x21f   : > { %1508 = vrot.lane.b32.xlu0 %v1339_v62, %s1941_s9  ;;  %1461 = vrot.lane.b32.xlu1 %v1438_v35, %s1940_s30 }
 0x221   : > { %v1302_v24 = vpop.permute.xlu1 %1301  ;;  %v1448_v25 = vpop.permute.xlu0 %1447 }
 0x223   : > { %1510 = vrot.lane.b32.xlu1 %v1487_v55, %s1941_s9  ;;  %997 = vperm.xlu0 %1920, %v994_v2  }
 0x225   : > { %v1351_v63 = vpop.permute.xlu1 %1350  ;;  %v1497_v1 = vpop.permute.xlu0 %1496 }
 0x227   : > { %1541 = vperm.xlu1 %1921, %v1538_v3  }
 0x229   : > { %v1155_v5 = vpop.permute.xlu1 %1154  ;;  %v1157_v6 = vpop.permute.xlu0 %1156 }
 0x22a   : > { %1178 = vst.msk [vmem:[#allocation5 + $0x8] sm:$0xff] %vm1176_vm14, %v1155_v5  ;;  %1179 = vst.msk [vmem:[#allocation5 + $0x10] sm:$0xff] %vm1176_vm14, %v1157_v6 }
 0x22d   : > { %v1204_v0 = vpop.permute.xlu1 %1203  ;;  %v1206_v7 = vpop.permute.xlu0 %1205 }
 0x22e   : > { %1227 = vst.msk [vmem:[#allocation5 + $0x8] sm:$0xff] %vm1225_vm15, %v1204_v0  ;;  %1228 = vst.msk [vmem:[#allocation5 + $0x10] sm:$0xff] %vm1225_vm15, %v1206_v7 }
 0x22f   : > { %1276 = vst.msk [vmem:[#allocation5 + $0x8] sm:$0xff] %vm1274_vm0, %v1253_v36 }
 0x230   : > { %1325 = vst.msk [vmem:[#allocation5 + $0x8] sm:$0xff] %vm1323_vm3, %v1302_v24 }
 0x231   : > { %v1257_v8 = vpop.permute.xlu1 %1256  ;;  %v1251_v9 = vpop.permute.xlu0 %1250  ;;  %1374 = vst.msk [vmem:[#allocation5 + $0x8] sm:$0xff] %vm1372_vm4, %v1351_v63 }
 0x232   : > { %1275 = vst.msk [vmem:[#allocation5] sm:$0xff] %vm1274_vm0, %v1251_v9 }
 0x235   : > { %v1306_v10 = vpop.permute.xlu1 %1305  ;;  %v1300_v11 = vpop.permute.xlu0 %1299 }
 0x236   : > { %1324 = vst.msk [vmem:[#allocation5] sm:$0xff] %vm1323_vm3, %v1300_v11 }
 0x239   : > { %v1355_v12 = vpop.permute.xlu1 %1354  ;;  %v1349_v13 = vpop.permute.xlu0 %1348 }
 0x23a   : > { %1373 = vst.msk [vmem:[#allocation5] sm:$0xff] %vm1372_vm4, %v1349_v13 }
 0x23b   : > { %1423 = vst.msk [vmem:[#allocation5] sm:$0xff] %vm1422_vm5, %v1399_v54 }
 0x23c   : > { %1472 = vst.msk [vmem:[#allocation5] sm:$0xff] %vm1471_vm6, %v1448_v25 }
 0x23d   : > { %1521 = vst.msk [vmem:[#allocation5] sm:$0xff] %vm1520_vm7, %v1497_v1  ;;  %v1401_v14 = vpop.permute.xlu1 %1400  ;;  %v1403_v15 = vpop.permute.xlu0 %1402 }
 0x23e   : > { %1424 = vst.msk [vmem:[#allocation5 + $0x8] sm:$0xff] %vm1422_vm5, %v1401_v14 }
 0x241   : > { %v1450_v16 = vpop.permute.xlu1 %1449  ;;  %v1452_v17 = vpop.permute.xlu0 %1451 }
 0x242   : > { %1473 = vst.msk [vmem:[#allocation5 + $0x8] sm:$0xff] %vm1471_vm6, %v1450_v16 }
 0x244   : > { %v1530_v26 = vld [vmem:[#allocation5] sm:$0xff] }
 0x245   : > { %v1499_v18 = vpop.permute.xlu1 %1498  ;;  %v1501_v19 = vpop.permute.xlu0 %1500 }
 0x246   : > { %1522 = vst.msk [vmem:[#allocation5 + $0x8] sm:$0xff] %vm1520_vm7, %v1499_v18 }
 0x249   : > { %v1159_v20 = vpop.permute.xlu1 %1158  ;;  %v1161_v21 = vpop.permute.xlu0 %1160 }
 0x24a   : > { %1180 = vst.msk [vmem:[#allocation5 + $0x18] sm:$0xff] %vm1176_vm14, %v1159_v20  ;;  %1181 = vst.msk [vmem:[#allocation5 + $0x20] sm:$0xff] %vm1176_vm14, %v1161_v21 }
 0x24d   : > { %v1208_v22 = vpop.permute.xlu1 %1207  ;;  %v1210_v23 = vpop.permute.xlu0 %1209  ;;  %v1531_v27 = vld [vmem:[#allocation5 + $0x8] sm:$0xff] }
 0x24e   : > { %1229 = vst.msk [vmem:[#allocation5 + $0x18] sm:$0xff] %vm1225_vm15, %v1208_v22  ;;  %1230 = vst.msk [vmem:[#allocation5 + $0x20] sm:$0xff] %vm1225_vm15, %v1210_v23  ;;  %v1878_v33 = vpack.c.bf16 %v1531_v27, %v1530_v26 }
 0x24f   : > { %1278 = vst.msk [vmem:[#allocation5 + $0x18] sm:$0xff] %vm1274_vm0, %v1257_v8 }
 0x250   : > { %1327 = vst.msk [vmem:[#allocation5 + $0x18] sm:$0xff] %vm1323_vm3, %v1306_v10  ;;  %1880 = vmatpush3.bf16.xpose.msk.msra.mxu1 %vm2588_vm9, %v1878_v33 }
 0x251   : > { %1376 = vst.msk [vmem:[#allocation5 + $0x18] sm:$0xff] %vm1372_vm4, %v1355_v12  ;;  %v1261_v37 = vpop.permute.xlu1 %1260  ;;  %v1255_v38 = vpop.permute.xlu0 %1254  ;;  %1881 = vmatprep.subr.bf16.mxu1 %v1943_v31 }
 0x252   : > { %1277 = vst.msk [vmem:[#allocation5 + $0x10] sm:$0xff] %vm1274_vm0, %v1255_v38 }
 0x255   : > { %v1310_v39 = vpop.permute.xlu1 %1309  ;;  %v1304_v40 = vpop.permute.xlu0 %1303 }
 0x256   : > { %1326 = vst.msk [vmem:[#allocation5 + $0x10] sm:$0xff] %vm1323_vm3, %v1304_v40 }
 0x259   : > { %v1359_v41 = vpop.permute.xlu1 %1358  ;;  %v1353_v42 = vpop.permute.xlu0 %1352 }
 0x25a   : > { %1375 = vst.msk [vmem:[#allocation5 + $0x10] sm:$0xff] %vm1372_vm4, %v1353_v42 }
 0x25b   : > { %1425 = vst.msk [vmem:[#allocation5 + $0x10] sm:$0xff] %vm1422_vm5, %v1403_v15 }
 0x25c   : > { %1474 = vst.msk [vmem:[#allocation5 + $0x10] sm:$0xff] %vm1471_vm6, %v1452_v17 }
 0x25d   : > { %1523 = vst.msk [vmem:[#allocation5 + $0x10] sm:$0xff] %vm1520_vm7, %v1501_v19  ;;  %v1405_v43 = vpop.permute.xlu1 %1404  ;;  %v1407_v44 = vpop.permute.xlu0 %1406 }
 0x25e   : > { %1426 = vst.msk [vmem:[#allocation5 + $0x18] sm:$0xff] %vm1422_vm5, %v1405_v43 }
 0x261   : > { %v1454_v45 = vpop.permute.xlu1 %1453  ;;  %v1456_v46 = vpop.permute.xlu0 %1455 }
 0x262   : > { %1475 = vst.msk [vmem:[#allocation5 + $0x18] sm:$0xff] %vm1471_vm6, %v1454_v45 }
 0x264   : > { %v1532_v53 = vld [vmem:[#allocation5 + $0x10] sm:$0xff] }
 0x265   : > { %v1503_v47 = vpop.permute.xlu1 %1502  ;;  %v1505_v48 = vpop.permute.xlu0 %1504 }
 0x266   : > { %1524 = vst.msk [vmem:[#allocation5 + $0x18] sm:$0xff] %vm1520_vm7, %v1503_v47 }
 0x269   : > { %v1163_v49 = vpop.permute.xlu1 %1162  ;;  %v1165_v50 = vpop.permute.xlu0 %1164 }
 0x26a   : > { %1182 = vst.msk [vmem:[#allocation5 + $0x28] sm:$0xff] %vm1176_vm14, %v1163_v49  ;;  %1183 = vst.msk [vmem:[#allocation5 + $0x30] sm:$0xff] %vm1176_vm14, %v1165_v50 }
 0x26d   : > { %v1212_v51 = vpop.permute.xlu1 %1211  ;;  %v1214_v52 = vpop.permute.xlu0 %1213  ;;  %v1533_v56 = vld [vmem:[#allocation5 + $0x18] sm:$0xff] }
 0x26e   : > { %1231 = vst.msk [vmem:[#allocation5 + $0x28] sm:$0xff] %vm1225_vm15, %v1212_v51  ;;  %1232 = vst.msk [vmem:[#allocation5 + $0x30] sm:$0xff] %vm1225_vm15, %v1214_v52  ;;  %v1882_v57 = vpack.c.bf16 %v1533_v56, %v1532_v53 }
 0x26f   : > { %1280 = vst.msk [vmem:[#allocation5 + $0x28] sm:$0xff] %vm1274_vm0, %v1261_v37 }
 0x270   : > { %1329 = vst.msk [vmem:[#allocation5 + $0x28] sm:$0xff] %vm1323_vm3, %v1310_v39  ;;  %1884 = vmatpush3.bf16.xpose.msk.msra.mxu1 %vm2588_vm9, %v1882_v57 }
 0x271   : > { %1378 = vst.msk [vmem:[#allocation5 + $0x28] sm:$0xff] %vm1372_vm4, %v1359_v41  ;;  %v1265_v59 = vpop.permute.xlu1 %1264  ;;  %v1259_v60 = vpop.permute.xlu0 %1258  ;;  %1885 = vmatprep.subr.bf16.mxu1 %v1943_v31 }
 0x272   : > { %1279 = vst.msk [vmem:[#allocation5 + $0x20] sm:$0xff] %vm1274_vm0, %v1259_v60 }
 0x275   : > { %v1314_v61 = vpop.permute.xlu1 %1313  ;;  %v1308_v62 = vpop.permute.xlu0 %1307 }
 0x276   : > { %1328 = vst.msk [vmem:[#allocation5 + $0x20] sm:$0xff] %vm1323_vm3, %v1308_v62 }
 0x279   : > { %v1363_v29 = vpop.permute.xlu1 %1362  ;;  %v1357_v30 = vpop.permute.xlu0 %1356 }
 0x27a   : > { %1377 = vst.msk [vmem:[#allocation5 + $0x20] sm:$0xff] %vm1372_vm4, %v1357_v30 }
 0x27b   : > { %1427 = vst.msk [vmem:[#allocation5 + $0x20] sm:$0xff] %vm1422_vm5, %v1407_v44 }
 0x27c   : > { %1476 = vst.msk [vmem:[#allocation5 + $0x20] sm:$0xff] %vm1471_vm6, %v1456_v46 }
 0x27d   : > { %1525 = vst.msk [vmem:[#allocation5 + $0x20] sm:$0xff] %vm1520_vm7, %v1505_v48  ;;  %v1409_v34 = vpop.permute.xlu1 %1408  ;;  %v1411_v35 = vpop.permute.xlu0 %1410 }
 0x27e   : > { %1428 = vst.msk [vmem:[#allocation5 + $0x28] sm:$0xff] %vm1422_vm5, %v1409_v34 }
 0x281   : > { %v1458_v36 = vpop.permute.xlu1 %1457  ;;  %v1460_v54 = vpop.permute.xlu0 %1459 }
 0x282   : > { %1477 = vst.msk [vmem:[#allocation5 + $0x28] sm:$0xff] %vm1471_vm6, %v1458_v36 }
 0x284   : > { %v1534_v2 = vld [vmem:[#allocation5 + $0x20] sm:$0xff] }
 0x285   : > { %v1507_v55 = vpop.permute.xlu1 %1506  ;;  %v1263_v58 = vpop.permute.xlu0 %1262 }
 0x286   : > { %1526 = vst.msk [vmem:[#allocation5 + $0x28] sm:$0xff] %vm1520_vm7, %v1507_v55 }
 0x287   : > { %1281 = vst.msk [vmem:[#allocation5 + $0x30] sm:$0xff] %vm1274_vm0, %v1263_v58 }
 0x289   : > { %v1167_v24 = vpop.permute.xlu1 %1166  ;;  %v1312_v25 = vpop.permute.xlu0 %1311 }
 0x28a   : > { %1184 = vst.msk [vmem:[#allocation5 + $0x38] sm:$0xff] %vm1176_vm14, %v1167_v24 }
 0x28b   : > { %1330 = vst.msk [vmem:[#allocation5 + $0x30] sm:$0xff] %vm1323_vm3, %v1312_v25 }
 0x28d   : > { %v1216_v63 = vpop.permute.xlu1 %1215  ;;  %v1361_v1 = vpop.permute.xlu0 %1360  ;;  %v1535_v3 = vld [vmem:[#allocation5 + $0x28] sm:$0xff] }
 0x28e   : > { %1233 = vst.msk [vmem:[#allocation5 + $0x38] sm:$0xff] %vm1225_vm15, %v1216_v63  ;;  %v1886_v4 = vpack.c.bf16 %v1535_v3, %v1534_v2 }
 0x28f   : > { %1379 = vst.msk [vmem:[#allocation5 + $0x30] sm:$0xff] %vm1372_vm4, %v1361_v1 }
 0x290   : > { %1282 = vst.msk [vmem:[#allocation5 + $0x38] sm:$0xff] %vm1274_vm0, %v1265_v59  ;;  %1888 = vmatpush3.bf16.xpose.msk.msra.mxu1 %vm2588_vm9, %v1886_v4 }
 0x291   : > { %1429 = vst.msk [vmem:[#allocation5 + $0x30] sm:$0xff] %vm1422_vm5, %v1411_v35  ;;  %v1462_v5 = vpop.permute.xlu1 %1461  ;;  %v1509_v6 = vpop.permute.xlu0 %1508  ;;  %1889 = vmatprep.subr.bf16.mxu1 %v1943_v31  ;;  %v1529_v31 = vld [vmem:[%s2662_s3] sm:$0xff] }
 0x292   : > { %1331 = vst.msk [vmem:[#allocation5 + $0x38] sm:$0xff] %vm1323_vm3, %v1314_v61 }
 0x293   : > { %1478 = vst.msk [vmem:[#allocation5 + $0x30] sm:$0xff] %vm1471_vm6, %v1460_v54 }
 0x294   : > { %1380 = vst.msk [vmem:[#allocation5 + $0x38] sm:$0xff] %vm1372_vm4, %v1363_v29 }
 0x295   : > { %1430 = vst.msk [vmem:[#allocation5 + $0x38] sm:$0xff] %vm1422_vm5, %v2545_v32  ;;  %v1511_v0 = vpop.permute.xlu1 %1510  ;;  %v1085_v32 = vpop.f32.mrb[8].mxu0 }
 0x296   : > { %1527 = vst.msk [vmem:[#allocation5 + $0x30] sm:$0xff] %vm1520_vm7, %v1509_v6  ;;  %v1833_v10 = vpop.f32.mrb[9].mxu0 }
 0x297   : > { %1479 = vst.msk [vmem:[#allocation5 + $0x38] sm:$0xff] %vm1471_vm6, %v1462_v5 }
 0x298   : > { %1528 = vst.msk [vmem:[#allocation5 + $0x38] sm:$0xff] %vm1520_vm7, %v1511_v0 }
 0x29d   : > { %v1536_v7 = vld [vmem:[#allocation5 + $0x30] sm:$0xff] }
 0x29f   : > { %v1537_v8 = vld [vmem:[#allocation5 + $0x38] sm:$0xff] }
 0x2a0   : > { %v1890_v9 = vpack.c.bf16 %v1537_v8, %v1536_v7 }
 0x2a2   : > { %1892 = vmatpush3.bf16.xpose.msk.msra.mxu1 %vm2588_vm9, %v1890_v9  ;;  %v998_v11 = vpop.permute.xlu0 %997 }
 0x2a3   : > { %v1086_v12 = vadd.f32 %v1085_v32, %v998_v11 }
 0x2a6   : > { %v1542_v13 = vpop.permute.xlu1 %1541 }
 0x2a7   : > { %v1894_v14 = vadd.f32 %v1542_v13, %v1086_v12 }
 0x2a9   : > { %1851 = vmatmul.mubr.msk.f32.vlgmr.msra.gmra.mrb[0].mxu1 %vm1544_vm8, %v1529_v31 }
 0x37c   : > { %v1638_v15 = vpop.f32.mrb[0].mxu1 }
 0x37d   : > { %v1895_v16 = vadd.f32 %v1894_v14, %v1638_v15  ;;  %v1852_v17 = vpop.f32.mrb[1].mxu1 }
 0x37f   : > { %v1643_v18 = vmax.f32 %v1895_v16, 0.0 }
 0x381   : > { %1645 = vst.msk [vmem:[%s276_s21] sm:$0xff] %vm1644_vm10, %v1643_v18 }
 0x382 PF: > { %s17_s24 = sadd.s32 1, %s1928_s24  }
 0x383   : > { %p14_p4 = scmp.ge.s32.totalorder %s17_s24, 4  }
 0x385   :  { %16 = sbr.rel (!%p14_p4) target bundleno = 1 (0x1), region = 88 }

</bundles_post_ra>
